<compile_context>
chip_gen: v5e
topology: v5e:2x2
jax: 0.10.0
libtpu: 0.0.40
codegen_flags: <defaults>
</compile_context>

<pallas_src>
from functools import partial

import jax
import jax.numpy as jnp
import numpy as np
from jax.experimental import pallas as pl
from jax.experimental.pallas import tpu as pltpu


def _stable_sigmoid(x):
    t = jnp.exp(-jnp.abs(x))
    inv = 1.0 / (1.0 + t)
    return jnp.where(x >= 0.0, inv, t * inv)


def build_odefunc_kernel(n_layers, din, dcond, hidden):
    """Feature-major forward (u = W^T h * g + c) + hand-derived VJP w.r.t. z.

    Refs: s (SMEM), activation slab (f_in, TB) = [z|cond|m|e]^T, packed weights,
    output slab (din+2, TB) = [dz^T ; -div ; sqjacnorm].
    """
    dzc = din + dcond
    out_dims = [hidden] * (n_layers - 1) + [din]

    def kernel(s_ref, in_ref, wt0_ref, whf_ref, whb_ref, wio_ref, wlb_ref, pv_ref,
               out_ref):
        s = s_ref[0]

        h = in_ref[0:dzc, :]                          # (dzc, TB)  [z | cond]^T
        m = in_ref[dzc:dzc + din, :]                  # (din, TB)
        e = in_ref[dzc + din:dzc + 2 * din, :]        # (din, TB)

        # gates g_l = sigmoid(s*G_l + gb_l), folded bias c_l = b_l*g_l + s*Bw_l,
        # computed from the SMEM scalar s (tiny (out_l, 1) column vectors).
        gs, cs = [], []
        for l in range(n_layers):
            o = out_dims[l]
            b, G = pv_ref[l, 0:o, 0:1], pv_ref[l, 0:o, 1:2]
            gb, Bw = pv_ref[l, 0:o, 2:3], pv_ref[l, 0:o, 3:4]
            g = _stable_sigmoid(s * G + gb)
            gs.append(g)
            cs.append(b * g + s * Bw)

        # ---------------- forward ----------------
        saved_sig = []
        for l in range(n_layers):
            if l == 0:
                WT = wt0_ref[...]                     # (H, dzc)
            elif l == n_layers - 1:
                WT = wio_ref[0]                       # (din, H)
            else:
                WT = whf_ref[l - 1]                   # (H, H)
            u = jnp.dot(WT, h, preferred_element_type=jnp.float32) * gs[l] + cs[l]
            if l < n_layers - 1:
                # softplus and its derivative share one exp
                t = jnp.exp(-jnp.abs(u))
                inv = 1.0 / (1.0 + t)
                saved_sig.append(jnp.where(u >= 0.0, inv, t * inv))
                h = jnp.maximum(u, 0.0) + jnp.log1p(t)
            else:
                h = u                                 # last layer is linear

        dz = h * m                                    # (din, TB)

        # -------- backward: cot_z = e^T d(dz)/d(z)  (feature-major: W @ cot) --------
        cot = e * m
        for l in range(n_layers - 1, 0, -1):
            W = wlb_ref[...] if l == n_layers - 1 else whb_ref[l - 1]
            cot = jnp.dot(W, cot * gs[l],
                          preferred_element_type=jnp.float32) * saved_sig[l - 1]
        cot_z = jnp.dot(wio_ref[1], cot * gs[0],
                        preferred_element_type=jnp.float32)          # (din, TB)

        # div_samples = 1: [-divergence ; sqjacnorm] rows appended to dz -> ONE store
        neg_div = -jnp.sum(cot_z * e, axis=0, keepdims=True)          # (1, TB)
        sqn = jnp.mean(cot_z * cot_z, axis=0, keepdims=True)          # (1, TB)
        out_ref[...] = jnp.concatenate([dz, neg_div, sqn], axis=0)

    return kernel


def init_params(key, input_dim, cond_dim, hidden_dim, hidden_layer=2):
    """Deterministic synthetic parameters matching the gated ODENet's layer shapes."""
    dims = [(input_dim + cond_dim, hidden_dim)]
    for _ in range(hidden_layer):
        dims.append((hidden_dim, hidden_dim))
    dims.append((hidden_dim, input_dim))
    params = []
    for (din, dout) in dims:
        key, k0, k1, k2, k3, k4 = jax.random.split(key, 6)
        W = jax.random.normal(k0, (din, dout), jnp.float32) / jnp.sqrt(din)   # linear.weight
        b = 0.1 * jax.random.normal(k1, (1, dout), jnp.float32)               # linear.bias
        G = jax.random.normal(k2, (1, dout), jnp.float32)                     # gate.weight
        gb = 0.1 * jax.random.normal(k3, (1, dout), jnp.float32)              # gate.bias
        Bw = jax.random.normal(k4, (1, dout), jnp.float32)                    # bias.weight
        params.append((W, b, G, gb, Bw))
    return params


def prepare_weights(params, input_dim):
    """s-independent packing/transposes, done ONCE per model (outside the solver loop)."""
    n_layers = len(params)
    assert n_layers >= 3, "need at least one hidden (H->H) layer"
    H = params[0][0].shape[1]
    din = input_dim

    wt0 = params[0][0].T                                               # (H, din+dc)
    whf = jnp.stack([params[l][0].T for l in range(1, n_layers - 1)])  # (n_hid, H, H)
    whb = jnp.stack([params[l][0] for l in range(1, n_layers - 1)])    # (n_hid, H, H)
    wio = jnp.stack([params[-1][0].T, params[0][0][:din, :]])          # (2, din, H)
    wlb = params[-1][0]                                                # (H, din)

    cols = []
    for (W, b, G, gb, Bw) in params:
        c = jnp.stack([b[0], G[0], gb[0], Bw[0]], axis=1)              # (out_l, 4)
        if c.shape[0] < H:
            c = jnp.pad(c, ((0, H - c.shape[0]), (0, 0)))
        cols.append(c)
    pv = jnp.stack(cols)                                               # (n_layers, H, 4)

    return dict(wt0=wt0, whf=whf, whb=whb, wio=wio, wlb=wlb, pv=pv)


@partial(jax.jit, static_argnames=("input_dim", "batch_tile"))
def odefunc_forward(s, z, cond, m, e, prep, *, input_dim, batch_tile=256):
    """ODEFunc.forward equivalent.

    Returns (dz, -divergence, zeros_like(cond), zeros_like(m), sqjacnorm)."""
    B = z.shape[0]
    din = input_dim
    dc = cond.shape[1]
    dzc = din + dc
    f_in = dzc + 2 * din
    H = prep["wt0"].shape[0]
    n_layers = prep["pv"].shape[0]

    # batch-on-lanes tiling: lane tile multiple of 128; keep >=2 grid steps when B allows
    target = max(128, (int(batch_tile) // 128) * 128)
    half_up = ((B + 1) // 2 + 127) // 128 * 128
    tb = max(128, min(target, half_up))
    Bp = (B + tb - 1) // tb * tb
    grid = (Bp // tb,)

    # ONE merged activation slab (lane-dense), padded lanes are inert (m=e=0 -> outputs 0)
    slab = jnp.concatenate([z, cond, m, e], axis=1).T.astype(jnp.float32)  # (f_in, B)
    if Bp != B:
        slab = jnp.pad(slab, ((0, 0), (0, Bp - B)))
    s_arr = jnp.asarray(s, jnp.float32).reshape(1)

    def resident(a):  # full-block, constant index_map -> stays VMEM-resident
        return pl.BlockSpec(a.shape, lambda i, _nd=a.ndim: (0,) * _nd)

    in_specs = [
        pl.BlockSpec(memory_space=pltpu.MemorySpace.SMEM),            # scalar s
        pl.BlockSpec((f_in, tb), lambda i: (0, i)),                   # activation slab
        resident(prep["wt0"]), resident(prep["whf"]), resident(prep["whb"]),
        resident(prep["wio"]), resident(prep["wlb"]), resident(prep["pv"]),
    ]
    out_specs = pl.BlockSpec((din + 2, tb), lambda i: (0, i))

    # VMEM budget: resident weights + double-buffered tiles + saved activations + headroom
    w_bytes = 4 * sum(int(np.prod(prep[k].shape))
                      for k in ("wt0", "whf", "whb", "wio", "wlb", "pv"))
    act_bytes = 4 * tb * (f_in + din + 2)
    scratch = 4 * tb * H * n_layers
    vmem_limit = int(min(64 << 20,
                         max(8 << 20, 2 * w_bytes + 4 * act_bytes + 2 * scratch + (4 << 20))))

    out = pl.pallas_call(
        build_odefunc_kernel(n_layers, din, dc, H),
        out_shape=jax.ShapeDtypeStruct((din + 2, Bp), jnp.float32),
        grid=grid,
        in_specs=in_specs,
        out_specs=out_specs,
        compiler_params=pltpu.CompilerParams(
            dimension_semantics=("parallel",),
            vmem_limit_bytes=vmem_limit),
    )(s_arr, slab, prep["wt0"], prep["whf"], prep["whb"],
      prep["wio"], prep["wlb"], prep["pv"])

    dz = out[:din, :B].T
    neg_div = out[din:din + 1, :B].T
    sqjacnorm = out[din + 1:din + 2, :B].T
    return dz, neg_div, jnp.zeros_like(cond), jnp.zeros_like(m), sqjacnorm


# ---------------- pure-JAX reference (correctness check only) ----------------
def odenet_ref(s, z, cond, m, params):
    n_layers = len(params)
    h = jnp.concatenate([z, cond], axis=1)
    for l, (W, b, G, gb, Bw) in enumerate(params):
        g = jax.nn.sigmoid(s * G + gb)
        u = (h @ W + b) * g + s * Bw
        h = jax.nn.softplus(u) if l < n_layers - 1 else u
    return h * m


if __name__ == "__main__":
    B, Din, Dc, H = 16, 4, 4, 32
    key = jax.random.PRNGKey(0)
    kp, kz, kc, km, ke = jax.random.split(key, 5)

    params = init_params(kp, Din, Dc, H, hidden_layer=2)
    prep = prepare_weights(params, Din)

    z = jax.random.normal(kz, (B, Din), jnp.float32)
    cond = jax.random.normal(kc, (B, Dc), jnp.float32)
    m = (jax.random.uniform(km, (B, Din)) > 0.2).astype(jnp.float32)     # mask (states[3])
    e = jax.random.normal(ke, (B, Din), jnp.float32)                     # Hutchinson sample
    s = jnp.float32(0.35)

    outs = jax.block_until_ready(
        odefunc_forward(s, z, cond, m, e, prep, input_dim=Din, batch_tile=256))
    dz, neg_div, zeros_cond, zeros_m, sqjacnorm = outs

    # correctness against pure-JAX autodiff reference
    dz_ref = odenet_ref(s, z, cond, m, params)
    _, vjp_fn = jax.vjp(lambda zz: odenet_ref(s, zz, cond, m, params), z)
    (cot_z,) = vjp_fn(e)
    div_ref = jnp.sum(cot_z * e, axis=1, keepdims=True)
    sqn_ref = jnp.mean(cot_z ** 2, axis=1, keepdims=True)

    np.testing.assert_allclose(np.asarray(dz), np.asarray(dz_ref), rtol=1e-5, atol=1e-5)
    np.testing.assert_allclose(np.asarray(neg_div), -np.asarray(div_ref), rtol=1e-4, atol=1e-5)
    np.testing.assert_allclose(np.asarray(sqjacnorm), np.asarray(sqn_ref), rtol=1e-4, atol=1e-5)
    assert zeros_cond.shape == cond.shape and zeros_m.shape == m.shape

    print("KERNEL_OK")
</pallas_src>

<mosaic_0001>
module attributes {stable_mosaic.version = 11 : i64} {
  func.func @kernel(%arg0: i32, %arg1: memref<1xf32, #tpu.memory_space<smem>>, %arg2: memref<16x128xf32, #tpu.memory_space<vmem>>, %arg3: memref<32x8xf32, #tpu.memory_space<vmem>>, %arg4: memref<2x32x32xf32, #tpu.memory_space<vmem>>, %arg5: memref<2x32x32xf32, #tpu.memory_space<vmem>>, %arg6: memref<2x4x32xf32, #tpu.memory_space<vmem>>, %arg7: memref<32x4xf32, #tpu.memory_space<vmem>>, %arg8: memref<4x32x4xf32, #tpu.memory_space<vmem>>, %arg9: memref<6x128xf32, #tpu.memory_space<vmem>>) attributes {dimension_semantics = [#tpu.dimension_semantics<parallel>], iteration_bounds = array<i64: 1>, scalar_prefetch = 0 : i64, scratch_operands = 0 : i64, tpu.core_type = #tpu.core_type<tc>, window_params = [{transform_indices = @transform_0, window_bounds = array<i64: 1>}, {transform_indices = @transform_1, window_bounds = array<i64: 16, 128>}, {pipeline_mode = #tpu.pipeline_mode<synchronous>, transform_indices = @transform_2, window_bounds = array<i64: 32, 8>}, {pipeline_mode = #tpu.pipeline_mode<synchronous>, transform_indices = @transform_3, window_bounds = array<i64: 2, 32, 32>}, {pipeline_mode = #tpu.pipeline_mode<synchronous>, transform_indices = @transform_4, window_bounds = array<i64: 2, 32, 32>}, {pipeline_mode = #tpu.pipeline_mode<synchronous>, transform_indices = @transform_5, window_bounds = array<i64: 2, 4, 32>}, {pipeline_mode = #tpu.pipeline_mode<synchronous>, transform_indices = @transform_6, window_bounds = array<i64: 32, 4>}, {pipeline_mode = #tpu.pipeline_mode<synchronous>, transform_indices = @transform_7, window_bounds = array<i64: 4, 32, 4>}, {transform_indices = @transform_8, window_bounds = array<i64: 6, 128>}]} {
    %c0 = arith.constant 0 : index
    %0 = memref.load %arg1[%c0] : memref<1xf32, #tpu.memory_space<smem>>
    %c0_0 = arith.constant 0 : index
    %c0_1 = arith.constant 0 : index
    %1 = vector.load %arg2[%c0_0, %c0_1] : memref<16x128xf32, #tpu.memory_space<vmem>>, vector<8x128xf32>
    %c8 = arith.constant 8 : index
    %c0_2 = arith.constant 0 : index
    %2 = vector.load %arg2[%c8, %c0_2] : memref<16x128xf32, #tpu.memory_space<vmem>>, vector<4x128xf32>
    %c12 = arith.constant 12 : index
    %c0_3 = arith.constant 0 : index
    %3 = vector.load %arg2[%c12, %c0_3] : memref<16x128xf32, #tpu.memory_space<vmem>>, vector<4x128xf32>
    %c0_4 = arith.constant 0 : index
    %c0_5 = arith.constant 0 : index
    %c0_6 = arith.constant 0 : index
    %4 = vector.load %arg8[%c0_4, %c0_5, %c0_6] : memref<4x32x4xf32, #tpu.memory_space<vmem>>, vector<1x32x1xf32>
    %5 = vector.shape_cast %4 : vector<1x32x1xf32> to vector<32x1xf32>
    %c0_7 = arith.constant 0 : index
    %c0_8 = arith.constant 0 : index
    %c1 = arith.constant 1 : index
    %6 = vector.load %arg8[%c0_7, %c0_8, %c1] : memref<4x32x4xf32, #tpu.memory_space<vmem>>, vector<1x32x1xf32>
    %7 = vector.shape_cast %6 : vector<1x32x1xf32> to vector<32x1xf32>
    %c0_9 = arith.constant 0 : index
    %c0_10 = arith.constant 0 : index
    %c2 = arith.constant 2 : index
    %8 = vector.load %arg8[%c0_9, %c0_10, %c2] : memref<4x32x4xf32, #tpu.memory_space<vmem>>, vector<1x32x1xf32>
    %9 = vector.shape_cast %8 : vector<1x32x1xf32> to vector<32x1xf32>
    %c0_11 = arith.constant 0 : index
    %c0_12 = arith.constant 0 : index
    %c3 = arith.constant 3 : index
    %10 = vector.load %arg8[%c0_11, %c0_12, %c3] : memref<4x32x4xf32, #tpu.memory_space<vmem>>, vector<1x32x1xf32>
    %11 = vector.shape_cast %10 : vector<1x32x1xf32> to vector<32x1xf32>
    %12 = vector.broadcast %0 : f32 to vector<32x1xf32>
    %13 = arith.mulf %12, %7 : vector<32x1xf32>
    %14 = arith.addf %13, %9 : vector<32x1xf32>
    %15 = math.absf %14 : vector<32x1xf32>
    %cst = arith.constant 0.000000e+00 : f32
    %16 = vector.broadcast %cst : f32 to vector<32x1xf32>
    %17 = arith.subf %16, %15 : vector<32x1xf32>
    %18 = math.exp %17 : vector<32x1xf32>
    %cst_13 = arith.constant 1.000000e+00 : f32
    %19 = vector.broadcast %cst_13 : f32 to vector<32x1xf32>
    %20 = arith.addf %19, %18 : vector<32x1xf32>
    %cst_14 = arith.constant 1.000000e+00 : f32
    %21 = vector.broadcast %cst_14 : f32 to vector<32x1xf32>
    %22 = arith.divf %21, %20 : vector<32x1xf32>
    %cst_15 = arith.constant 0.000000e+00 : f32
    %23 = vector.broadcast %cst_15 : f32 to vector<32x1xf32>
    %24 = arith.cmpf oge, %14, %23 : vector<32x1xf32>
    %25 = arith.mulf %18, %22 : vector<32x1xf32>
    %26 = arith.select %24, %22, %25 : vector<32x1xi1>, vector<32x1xf32>
    %27 = arith.mulf %5, %26 : vector<32x1xf32>
    %28 = vector.broadcast %0 : f32 to vector<32x1xf32>
    %29 = arith.mulf %28, %11 : vector<32x1xf32>
    %30 = arith.addf %27, %29 : vector<32x1xf32>
    %c1_16 = arith.constant 1 : index
    %c0_17 = arith.constant 0 : index
    %c0_18 = arith.constant 0 : index
    %31 = vector.load %arg8[%c1_16, %c0_17, %c0_18] : memref<4x32x4xf32, #tpu.memory_space<vmem>>, vector<1x32x1xf32>
    %32 = vector.shape_cast %31 : vector<1x32x1xf32> to vector<32x1xf32>
    %c1_19 = arith.constant 1 : index
    %c0_20 = arith.constant 0 : index
    %c1_21 = arith.constant 1 : index
    %33 = vector.load %arg8[%c1_19, %c0_20, %c1_21] : memref<4x32x4xf32, #tpu.memory_space<vmem>>, vector<1x32x1xf32>
    %34 = vector.shape_cast %33 : vector<1x32x1xf32> to vector<32x1xf32>
    %c1_22 = arith.constant 1 : index
    %c0_23 = arith.constant 0 : index
    %c2_24 = arith.constant 2 : index
    %35 = vector.load %arg8[%c1_22, %c0_23, %c2_24] : memref<4x32x4xf32, #tpu.memory_space<vmem>>, vector<1x32x1xf32>
    %36 = vector.shape_cast %35 : vector<1x32x1xf32> to vector<32x1xf32>
    %c1_25 = arith.constant 1 : index
    %c0_26 = arith.constant 0 : index
    %c3_27 = arith.constant 3 : index
    %37 = vector.load %arg8[%c1_25, %c0_26, %c3_27] : memref<4x32x4xf32, #tpu.memory_space<vmem>>, vector<1x32x1xf32>
    %38 = vector.shape_cast %37 : vector<1x32x1xf32> to vector<32x1xf32>
    %39 = vector.broadcast %0 : f32 to vector<32x1xf32>
    %40 = arith.mulf %39, %34 : vector<32x1xf32>
    %41 = arith.addf %40, %36 : vector<32x1xf32>
    %42 = math.absf %41 : vector<32x1xf32>
    %cst_28 = arith.constant 0.000000e+00 : f32
    %43 = vector.broadcast %cst_28 : f32 to vector<32x1xf32>
    %44 = arith.subf %43, %42 : vector<32x1xf32>
    %45 = math.exp %44 : vector<32x1xf32>
    %cst_29 = arith.constant 1.000000e+00 : f32
    %46 = vector.broadcast %cst_29 : f32 to vector<32x1xf32>
    %47 = arith.addf %46, %45 : vector<32x1xf32>
    %cst_30 = arith.constant 1.000000e+00 : f32
    %48 = vector.broadcast %cst_30 : f32 to vector<32x1xf32>
    %49 = arith.divf %48, %47 : vector<32x1xf32>
    %cst_31 = arith.constant 0.000000e+00 : f32
    %50 = vector.broadcast %cst_31 : f32 to vector<32x1xf32>
    %51 = arith.cmpf oge, %41, %50 : vector<32x1xf32>
    %52 = arith.mulf %45, %49 : vector<32x1xf32>
    %53 = arith.select %51, %49, %52 : vector<32x1xi1>, vector<32x1xf32>
    %54 = arith.mulf %32, %53 : vector<32x1xf32>
    %55 = vector.broadcast %0 : f32 to vector<32x1xf32>
    %56 = arith.mulf %55, %38 : vector<32x1xf32>
    %57 = arith.addf %54, %56 : vector<32x1xf32>
    %c2_32 = arith.constant 2 : index
    %c0_33 = arith.constant 0 : index
    %c0_34 = arith.constant 0 : index
    %58 = vector.load %arg8[%c2_32, %c0_33, %c0_34] : memref<4x32x4xf32, #tpu.memory_space<vmem>>, vector<1x32x1xf32>
    %59 = vector.shape_cast %58 : vector<1x32x1xf32> to vector<32x1xf32>
    %c2_35 = arith.constant 2 : index
    %c0_36 = arith.constant 0 : index
    %c1_37 = arith.constant 1 : index
    %60 = vector.load %arg8[%c2_35, %c0_36, %c1_37] : memref<4x32x4xf32, #tpu.memory_space<vmem>>, vector<1x32x1xf32>
    %61 = vector.shape_cast %60 : vector<1x32x1xf32> to vector<32x1xf32>
    %c2_38 = arith.constant 2 : index
    %c0_39 = arith.constant 0 : index
    %c2_40 = arith.constant 2 : index
    %62 = vector.load %arg8[%c2_38, %c0_39, %c2_40] : memref<4x32x4xf32, #tpu.memory_space<vmem>>, vector<1x32x1xf32>
    %63 = vector.shape_cast %62 : vector<1x32x1xf32> to vector<32x1xf32>
    %c2_41 = arith.constant 2 : index
    %c0_42 = arith.constant 0 : index
    %c3_43 = arith.constant 3 : index
    %64 = vector.load %arg8[%c2_41, %c0_42, %c3_43] : memref<4x32x4xf32, #tpu.memory_space<vmem>>, vector<1x32x1xf32>
    %65 = vector.shape_cast %64 : vector<1x32x1xf32> to vector<32x1xf32>
    %66 = vector.broadcast %0 : f32 to vector<32x1xf32>
    %67 = arith.mulf %66, %61 : vector<32x1xf32>
    %68 = arith.addf %67, %63 : vector<32x1xf32>
    %69 = math.absf %68 : vector<32x1xf32>
    %cst_44 = arith.constant 0.000000e+00 : f32
    %70 = vector.broadcast %cst_44 : f32 to vector<32x1xf32>
    %71 = arith.subf %70, %69 : vector<32x1xf32>
    %72 = math.exp %71 : vector<32x1xf32>
    %cst_45 = arith.constant 1.000000e+00 : f32
    %73 = vector.broadcast %cst_45 : f32 to vector<32x1xf32>
    %74 = arith.addf %73, %72 : vector<32x1xf32>
    %cst_46 = arith.constant 1.000000e+00 : f32
    %75 = vector.broadcast %cst_46 : f32 to vector<32x1xf32>
    %76 = arith.divf %75, %74 : vector<32x1xf32>
    %cst_47 = arith.constant 0.000000e+00 : f32
    %77 = vector.broadcast %cst_47 : f32 to vector<32x1xf32>
    %78 = arith.cmpf oge, %68, %77 : vector<32x1xf32>
    %79 = arith.mulf %72, %76 : vector<32x1xf32>
    %80 = arith.select %78, %76, %79 : vector<32x1xi1>, vector<32x1xf32>
    %81 = arith.mulf %59, %80 : vector<32x1xf32>
    %82 = vector.broadcast %0 : f32 to vector<32x1xf32>
    %83 = arith.mulf %82, %65 : vector<32x1xf32>
    %84 = arith.addf %81, %83 : vector<32x1xf32>
    %c3_48 = arith.constant 3 : index
    %c0_49 = arith.constant 0 : index
    %c0_50 = arith.constant 0 : index
    %85 = vector.load %arg8[%c3_48, %c0_49, %c0_50] : memref<4x32x4xf32, #tpu.memory_space<vmem>>, vector<1x4x1xf32>
    %86 = vector.shape_cast %85 : vector<1x4x1xf32> to vector<4x1xf32>
    %c3_51 = arith.constant 3 : index
    %c0_52 = arith.constant 0 : index
    %c1_53 = arith.constant 1 : index
    %87 = vector.load %arg8[%c3_51, %c0_52, %c1_53] : memref<4x32x4xf32, #tpu.memory_space<vmem>>, vector<1x4x1xf32>
    %88 = vector.shape_cast %87 : vector<1x4x1xf32> to vector<4x1xf32>
    %c3_54 = arith.constant 3 : index
    %c0_55 = arith.constant 0 : index
    %c2_56 = arith.constant 2 : index
    %89 = vector.load %arg8[%c3_54, %c0_55, %c2_56] : memref<4x32x4xf32, #tpu.memory_space<vmem>>, vector<1x4x1xf32>
    %90 = vector.shape_cast %89 : vector<1x4x1xf32> to vector<4x1xf32>
    %c3_57 = arith.constant 3 : index
    %c0_58 = arith.constant 0 : index
    %c3_59 = arith.constant 3 : index
    %91 = vector.load %arg8[%c3_57, %c0_58, %c3_59] : memref<4x32x4xf32, #tpu.memory_space<vmem>>, vector<1x4x1xf32>
    %92 = vector.shape_cast %91 : vector<1x4x1xf32> to vector<4x1xf32>
    %93 = vector.broadcast %0 : f32 to vector<4x1xf32>
    %94 = arith.mulf %93, %88 : vector<4x1xf32>
    %95 = arith.addf %94, %90 : vector<4x1xf32>
    %96 = math.absf %95 : vector<4x1xf32>
    %cst_60 = arith.constant 0.000000e+00 : f32
    %97 = vector.broadcast %cst_60 : f32 to vector<4x1xf32>
    %98 = arith.subf %97, %96 : vector<4x1xf32>
    %99 = math.exp %98 : vector<4x1xf32>
    %cst_61 = arith.constant 1.000000e+00 : f32
    %100 = vector.broadcast %cst_61 : f32 to vector<4x1xf32>
    %101 = arith.addf %100, %99 : vector<4x1xf32>
    %cst_62 = arith.constant 1.000000e+00 : f32
    %102 = vector.broadcast %cst_62 : f32 to vector<4x1xf32>
    %103 = arith.divf %102, %101 : vector<4x1xf32>
    %cst_63 = arith.constant 0.000000e+00 : f32
    %104 = vector.broadcast %cst_63 : f32 to vector<4x1xf32>
    %105 = arith.cmpf oge, %95, %104 : vector<4x1xf32>
    %106 = arith.mulf %99, %103 : vector<4x1xf32>
    %107 = arith.select %105, %103, %106 : vector<4x1xi1>, vector<4x1xf32>
    %108 = arith.mulf %86, %107 : vector<4x1xf32>
    %109 = vector.broadcast %0 : f32 to vector<4x1xf32>
    %110 = arith.mulf %109, %92 : vector<4x1xf32>
    %111 = arith.addf %108, %110 : vector<4x1xf32>
    %c0_64 = arith.constant 0 : index
    %c0_65 = arith.constant 0 : index
    %112 = vector.load %arg3[%c0_64, %c0_65] : memref<32x8xf32, #tpu.memory_space<vmem>>, vector<32x8xf32>
    %cst_66 = arith.constant dense<0.000000e+00> : vector<32x128xf32>
    %113 = tpu.matmul %112, %1, %cst_66 {dimension_numbers = #tpu.dot_dimension_numbers<[1], [0], [0], [1], [0, 0, 1, 1], [], []>} : vector<32x8xf32>, vector<8x128xf32>, vector<32x128xf32> -> vector<32x128xf32>
    %114 = vector.broadcast %26 : vector<32x1xf32> to vector<32x128xf32>
    %115 = arith.mulf %113, %114 : vector<32x128xf32>
    %116 = vector.broadcast %30 : vector<32x1xf32> to vector<32x128xf32>
    %117 = arith.addf %115, %116 : vector<32x128xf32>
    %118 = math.absf %117 : vector<32x128xf32>
    %cst_67 = arith.constant 0.000000e+00 : f32
    %119 = vector.broadcast %cst_67 : f32 to vector<32x128xf32>
    %120 = arith.subf %119, %118 : vector<32x128xf32>
    %121 = math.exp %120 : vector<32x128xf32>
    %cst_68 = arith.constant 1.000000e+00 : f32
    %122 = vector.broadcast %cst_68 : f32 to vector<32x128xf32>
    %123 = arith.addf %122, %121 : vector<32x128xf32>
    %cst_69 = arith.constant 1.000000e+00 : f32
    %124 = vector.broadcast %cst_69 : f32 to vector<32x128xf32>
    %125 = arith.divf %124, %123 : vector<32x128xf32>
    %cst_70 = arith.constant 0.000000e+00 : f32
    %126 = vector.broadcast %cst_70 : f32 to vector<32x128xf32>
    %127 = arith.cmpf oge, %117, %126 : vector<32x128xf32>
    %128 = arith.mulf %121, %125 : vector<32x128xf32>
    %129 = arith.select %127, %125, %128 : vector<32x128xi1>, vector<32x128xf32>
    %cst_71 = arith.constant 0.000000e+00 : f32
    %130 = vector.broadcast %cst_71 : f32 to vector<32x128xf32>
    %131 = arith.maximumf %117, %130 : vector<32x128xf32>
    %132 = math.log1p %121 : vector<32x128xf32>
    %133 = arith.addf %131, %132 : vector<32x128xf32>
    %c0_72 = arith.constant 0 : index
    %c0_73 = arith.constant 0 : index
    %c0_74 = arith.constant 0 : index
    %134 = vector.load %arg4[%c0_72, %c0_73, %c0_74] : memref<2x32x32xf32, #tpu.memory_space<vmem>>, vector<1x32x32xf32>
    %135 = vector.shape_cast %134 : vector<1x32x32xf32> to vector<32x32xf32>
    %cst_75 = arith.constant dense<0.000000e+00> : vector<32x128xf32>
    %136 = tpu.matmul %135, %133, %cst_75 {dimension_numbers = #tpu.dot_dimension_numbers<[1], [0], [0], [1], [0, 0, 1, 1], [], []>} : vector<32x32xf32>, vector<32x128xf32>, vector<32x128xf32> -> vector<32x128xf32>
    %137 = vector.broadcast %53 : vector<32x1xf32> to vector<32x128xf32>
    %138 = arith.mulf %136, %137 : vector<32x128xf32>
    %139 = vector.broadcast %57 : vector<32x1xf32> to vector<32x128xf32>
    %140 = arith.addf %138, %139 : vector<32x128xf32>
    %141 = math.absf %140 : vector<32x128xf32>
    %cst_76 = arith.constant 0.000000e+00 : f32
    %142 = vector.broadcast %cst_76 : f32 to vector<32x128xf32>
    %143 = arith.subf %142, %141 : vector<32x128xf32>
    %144 = math.exp %143 : vector<32x128xf32>
    %cst_77 = arith.constant 1.000000e+00 : f32
    %145 = vector.broadcast %cst_77 : f32 to vector<32x128xf32>
    %146 = arith.addf %145, %144 : vector<32x128xf32>
    %cst_78 = arith.constant 1.000000e+00 : f32
    %147 = vector.broadcast %cst_78 : f32 to vector<32x128xf32>
    %148 = arith.divf %147, %146 : vector<32x128xf32>
    %cst_79 = arith.constant 0.000000e+00 : f32
    %149 = vector.broadcast %cst_79 : f32 to vector<32x128xf32>
    %150 = arith.cmpf oge, %140, %149 : vector<32x128xf32>
    %151 = arith.mulf %144, %148 : vector<32x128xf32>
    %152 = arith.select %150, %148, %151 : vector<32x128xi1>, vector<32x128xf32>
    %cst_80 = arith.constant 0.000000e+00 : f32
    %153 = vector.broadcast %cst_80 : f32 to vector<32x128xf32>
    %154 = arith.maximumf %140, %153 : vector<32x128xf32>
    %155 = math.log1p %144 : vector<32x128xf32>
    %156 = arith.addf %154, %155 : vector<32x128xf32>
    %c1_81 = arith.constant 1 : index
    %c0_82 = arith.constant 0 : index
    %c0_83 = arith.constant 0 : index
    %157 = vector.load %arg4[%c1_81, %c0_82, %c0_83] : memref<2x32x32xf32, #tpu.memory_space<vmem>>, vector<1x32x32xf32>
    %158 = vector.shape_cast %157 : vector<1x32x32xf32> to vector<32x32xf32>
    %cst_84 = arith.constant dense<0.000000e+00> : vector<32x128xf32>
    %159 = tpu.matmul %158, %156, %cst_84 {dimension_numbers = #tpu.dot_dimension_numbers<[1], [0], [0], [1], [0, 0, 1, 1], [], []>} : vector<32x32xf32>, vector<32x128xf32>, vector<32x128xf32> -> vector<32x128xf32>
    %160 = vector.broadcast %80 : vector<32x1xf32> to vector<32x128xf32>
    %161 = arith.mulf %159, %160 : vector<32x128xf32>
    %162 = vector.broadcast %84 : vector<32x1xf32> to vector<32x128xf32>
    %163 = arith.addf %161, %162 : vector<32x128xf32>
    %164 = math.absf %163 : vector<32x128xf32>
    %cst_85 = arith.constant 0.000000e+00 : f32
    %165 = vector.broadcast %cst_85 : f32 to vector<32x128xf32>
    %166 = arith.subf %165, %164 : vector<32x128xf32>
    %167 = math.exp %166 : vector<32x128xf32>
    %cst_86 = arith.constant 1.000000e+00 : f32
    %168 = vector.broadcast %cst_86 : f32 to vector<32x128xf32>
    %169 = arith.addf %168, %167 : vector<32x128xf32>
    %cst_87 = arith.constant 1.000000e+00 : f32
    %170 = vector.broadcast %cst_87 : f32 to vector<32x128xf32>
    %171 = arith.divf %170, %169 : vector<32x128xf32>
    %cst_88 = arith.constant 0.000000e+00 : f32
    %172 = vector.broadcast %cst_88 : f32 to vector<32x128xf32>
    %173 = arith.cmpf oge, %163, %172 : vector<32x128xf32>
    %174 = arith.mulf %167, %171 : vector<32x128xf32>
    %175 = arith.select %173, %171, %174 : vector<32x128xi1>, vector<32x128xf32>
    %cst_89 = arith.constant 0.000000e+00 : f32
    %176 = vector.broadcast %cst_89 : f32 to vector<32x128xf32>
    %177 = arith.maximumf %163, %176 : vector<32x128xf32>
    %178 = math.log1p %167 : vector<32x128xf32>
    %179 = arith.addf %177, %178 : vector<32x128xf32>
    %c0_90 = arith.constant 0 : index
    %c0_91 = arith.constant 0 : index
    %c0_92 = arith.constant 0 : index
    %180 = vector.load %arg6[%c0_90, %c0_91, %c0_92] : memref<2x4x32xf32, #tpu.memory_space<vmem>>, vector<1x4x32xf32>
    %181 = vector.shape_cast %180 : vector<1x4x32xf32> to vector<4x32xf32>
    %cst_93 = arith.constant dense<0.000000e+00> : vector<4x128xf32>
    %182 = tpu.matmul %181, %179, %cst_93 {dimension_numbers = #tpu.dot_dimension_numbers<[1], [0], [0], [1], [0, 0, 1, 1], [], []>} : vector<4x32xf32>, vector<32x128xf32>, vector<4x128xf32> -> vector<4x128xf32>
    %183 = vector.broadcast %107 : vector<4x1xf32> to vector<4x128xf32>
    %184 = arith.mulf %182, %183 : vector<4x128xf32>
    %185 = vector.broadcast %111 : vector<4x1xf32> to vector<4x128xf32>
    %186 = arith.addf %184, %185 : vector<4x128xf32>
    %187 = arith.mulf %186, %2 : vector<4x128xf32>
    %188 = arith.mulf %3, %2 : vector<4x128xf32>
    %c0_94 = arith.constant 0 : index
    %c0_95 = arith.constant 0 : index
    %189 = vector.load %arg7[%c0_94, %c0_95] : memref<32x4xf32, #tpu.memory_space<vmem>>, vector<32x4xf32>
    %190 = vector.broadcast %107 : vector<4x1xf32> to vector<4x128xf32>
    %191 = arith.mulf %188, %190 : vector<4x128xf32>
    %cst_96 = arith.constant dense<0.000000e+00> : vector<32x128xf32>
    %192 = tpu.matmul %189, %191, %cst_96 {dimension_numbers = #tpu.dot_dimension_numbers<[1], [0], [0], [1], [0, 0, 1, 1], [], []>} : vector<32x4xf32>, vector<4x128xf32>, vector<32x128xf32> -> vector<32x128xf32>
    %193 = arith.mulf %192, %175 : vector<32x128xf32>
    %c1_97 = arith.constant 1 : index
    %c0_98 = arith.constant 0 : index
    %c0_99 = arith.constant 0 : index
    %194 = vector.load %arg5[%c1_97, %c0_98, %c0_99] : memref<2x32x32xf32, #tpu.memory_space<vmem>>, vector<1x32x32xf32>
    %195 = vector.shape_cast %194 : vector<1x32x32xf32> to vector<32x32xf32>
    %196 = vector.broadcast %80 : vector<32x1xf32> to vector<32x128xf32>
    %197 = arith.mulf %193, %196 : vector<32x128xf32>
    %cst_100 = arith.constant dense<0.000000e+00> : vector<32x128xf32>
    %198 = tpu.matmul %195, %197, %cst_100 {dimension_numbers = #tpu.dot_dimension_numbers<[1], [0], [0], [1], [0, 0, 1, 1], [], []>} : vector<32x32xf32>, vector<32x128xf32>, vector<32x128xf32> -> vector<32x128xf32>
    %199 = arith.mulf %198, %152 : vector<32x128xf32>
    %c0_101 = arith.constant 0 : index
    %c0_102 = arith.constant 0 : index
    %c0_103 = arith.constant 0 : index
    %200 = vector.load %arg5[%c0_101, %c0_102, %c0_103] : memref<2x32x32xf32, #tpu.memory_space<vmem>>, vector<1x32x32xf32>
    %201 = vector.shape_cast %200 : vector<1x32x32xf32> to vector<32x32xf32>
    %202 = vector.broadcast %53 : vector<32x1xf32> to vector<32x128xf32>
    %203 = arith.mulf %199, %202 : vector<32x128xf32>
    %cst_104 = arith.constant dense<0.000000e+00> : vector<32x128xf32>
    %204 = tpu.matmul %201, %203, %cst_104 {dimension_numbers = #tpu.dot_dimension_numbers<[1], [0], [0], [1], [0, 0, 1, 1], [], []>} : vector<32x32xf32>, vector<32x128xf32>, vector<32x128xf32> -> vector<32x128xf32>
    %205 = arith.mulf %204, %129 : vector<32x128xf32>
    %c1_105 = arith.constant 1 : index
    %c0_106 = arith.constant 0 : index
    %c0_107 = arith.constant 0 : index
    %206 = vector.load %arg6[%c1_105, %c0_106, %c0_107] : memref<2x4x32xf32, #tpu.memory_space<vmem>>, vector<1x4x32xf32>
    %207 = vector.shape_cast %206 : vector<1x4x32xf32> to vector<4x32xf32>
    %208 = vector.broadcast %26 : vector<32x1xf32> to vector<32x128xf32>
    %209 = arith.mulf %205, %208 : vector<32x128xf32>
    %cst_108 = arith.constant dense<0.000000e+00> : vector<4x128xf32>
    %210 = tpu.matmul %207, %209, %cst_108 {dimension_numbers = #tpu.dot_dimension_numbers<[1], [0], [0], [1], [0, 0, 1, 1], [], []>} : vector<4x32xf32>, vector<32x128xf32>, vector<4x128xf32> -> vector<4x128xf32>
    %211 = arith.mulf %210, %3 : vector<4x128xf32>
    %cst_109 = arith.constant dense<0.000000e+00> : vector<128xf32>
    %212 = vector.multi_reduction <add>, %211, %cst_109 [0] : vector<4x128xf32> to vector<128xf32>
    %213 = vector.shape_cast %212 : vector<128xf32> to vector<1x128xf32>
    %cst_110 = arith.constant 0.000000e+00 : f32
    %214 = vector.broadcast %cst_110 : f32 to vector<1x128xf32>
    %215 = arith.subf %214, %213 : vector<1x128xf32>
    %216 = arith.mulf %210, %210 : vector<4x128xf32>
    %cst_111 = arith.constant dense<0.000000e+00> : vector<128xf32>
    %217 = vector.multi_reduction <add>, %216, %cst_111 [0] : vector<4x128xf32> to vector<128xf32>
    %218 = vector.shape_cast %217 : vector<128xf32> to vector<1x128xf32>
    %cst_112 = arith.constant 4.000000e+00 : f32
    %219 = vector.broadcast %cst_112 : f32 to vector<1x128xf32>
    %220 = arith.divf %218, %219 : vector<1x128xf32>
    %221 = tpu.concatenate %187, %215, %220 in 0 : vector<4x128xf32>, vector<1x128xf32>, vector<1x128xf32> -> vector<6x128xf32>
    %c0_113 = arith.constant 0 : index
    %c0_114 = arith.constant 0 : index
    %222 = vector.load %arg9[%c0_113, %c0_114] : memref<6x128xf32, #tpu.memory_space<vmem>>, vector<6x128xf32>
    tpu.vector_store %arg9[%c0_113, %c0_114], %221 {strides = array<i32>} : memref<6x128xf32, #tpu.memory_space<vmem>>, vector<6x128xf32>,
    return
  }
  func.func @transform_0(%arg0: i32) -> i32 {
    %c0_i32 = arith.constant 0 : i32
    %c0_i32_0 = arith.constant 0 : i32
    return %c0_i32 : i32
  }
  func.func @transform_1(%arg0: i32) -> (i32, i32) {
    %c0_i32 = arith.constant 0 : i32
    %c0_i32_0 = arith.constant 0 : i32
    return %c0_i32, %arg0 : i32, i32
  }
  func.func @transform_2(%arg0: i32) -> (i32, i32) {
    %c0_i32 = arith.constant 0 : i32
    %c0_i32_0 = arith.constant 0 : i32
    %c0_i32_1 = arith.constant 0 : i32
    return %c0_i32, %c0_i32_0 : i32, i32
  }
  func.func @transform_3(%arg0: i32) -> (i32, i32, i32) {
    %c0_i32 = arith.constant 0 : i32
    %c0_i32_0 = arith.constant 0 : i32
    %c0_i32_1 = arith.constant 0 : i32
    %c0_i32_2 = arith.constant 0 : i32
    return %c0_i32, %c0_i32_0, %c0_i32_1 : i32, i32, i32
  }
  func.func @transform_4(%arg0: i32) -> (i32, i32, i32) {
    %c0_i32 = arith.constant 0 : i32
    %c0_i32_0 = arith.constant 0 : i32
    %c0_i32_1 = arith.constant 0 : i32
    %c0_i32_2 = arith.constant 0 : i32
    return %c0_i32, %c0_i32_0, %c0_i32_1 : i32, i32, i32
  }
  func.func @transform_5(%arg0: i32) -> (i32, i32, i32) {
    %c0_i32 = arith.constant 0 : i32
    %c0_i32_0 = arith.constant 0 : i32
    %c0_i32_1 = arith.constant 0 : i32
    %c0_i32_2 = arith.constant 0 : i32
    return %c0_i32, %c0_i32_0, %c0_i32_1 : i32, i32, i32
  }
  func.func @transform_6(%arg0: i32) -> (i32, i32) {
    %c0_i32 = arith.constant 0 : i32
    %c0_i32_0 = arith.constant 0 : i32
    %c0_i32_1 = arith.constant 0 : i32
    return %c0_i32, %c0_i32_0 : i32, i32
  }
  func.func @transform_7(%arg0: i32) -> (i32, i32, i32) {
    %c0_i32 = arith.constant 0 : i32
    %c0_i32_0 = arith.constant 0 : i32
    %c0_i32_1 = arith.constant 0 : i32
    %c0_i32_2 = arith.constant 0 : i32
    return %c0_i32, %c0_i32_0, %c0_i32_1 : i32, i32, i32
  }
  func.func @transform_8(%arg0: i32) -> (i32, i32) {
    %c0_i32 = arith.constant 0 : i32
    %c0_i32_0 = arith.constant 0 : i32
    return %c0_i32, %arg0 : i32, i32
  }
}

</mosaic_0001>

<bundles_post_ra>
// kernel: odefunc_forward.1
= control target key start
LH: loop header
LB: loop body
LE: loop exit
PB: predicated region body
PF: predicated region fallthrough
CT: control target
= control target key end

     0   :  { %s1693_s9 = smov 127   ;;  %s1694_s16 = smov 125   ;;  %vm562_vm0 = vcmask 64512   ;;  %v1695_v38 = vmov 1   ;;  %s2475_s7 = inlined_call_operand.vmem [shape: f32[4,32,4], index: 7, kind: input, shape index: {}]   ;;  %s2476_s0 = inlined_call_operand.<no memory space> [shape: f32[1], index: 0, kind: input, shape index: {}]   ;;  %s2477_s1 = inlined_call_operand.vmem [shape: f32[16,128], index: 1, kind: input, shape index: {}]   ;;  %s2478_s2 = inlined_call_operand.vmem [shape: f32[32,8], index: 2, kind: input, shape index: {}]   ;;  %s2479_s3 = inlined_call_operand.vmem [shape: f32[2,32,32], index: 3, kind: input, shape index: {}]   ;;  %s2480_s5 = inlined_call_operand.vmem [shape: f32[2,4,32], index: 5, kind: input, shape index: {}]   ;;  %s2481_s6 = inlined_call_operand.vmem [shape: f32[32,4], index: 6, kind: input, shape index: {}]   ;;  %s2482_s4 = inlined_call_operand.vmem [shape: f32[2,32,32], index: 4, kind: input, shape index: {}]   ;;  %s2483_s8 = inlined_call_operand.vmem [shape: f32[6,128], index: 8, kind: output, shape index: {}]  }
   0x1   :  { %v1746_v0 = vld [vmem:[%s2475_s7 + $0x18] sm:$0xff]  ;;  %v1751_v1 = vld [vmem:[%s2475_s7 + $0x8] sm:$0xff]  ;;  %v1760_v2 = vld [vmem:[%s2475_s7 + $0x10] sm:$0xff]  ;;  %v1774_v4 = vstv %s2476_s0  ;;  %1553 = vset.pattern.permute.xlu1 %v1695_v38  ;;  %1552 = vset.pattern.permute.xlu0 %v1695_v38 }
   0x2   :  { %53 = vrot.lane.b32.xlu0 %v1746_v0, %s1693_s9  ;;  %49 = vrot.lane.b32.xlu1 %v1751_v1, %s1693_s9  ;;  %v1765_v3 = vld [vmem:[%s2475_s7] sm:$0xff]  ;;  %v42_v5 = vmul.f32 %v1774_v4, %v1746_v0  ;;  %v41_v6 = vmul.f32 %v1774_v4, %v1760_v2  ;;  %v1787_v8 = vmul.f32 %v1774_v4, %v1751_v1  ;;  %v561_v10 = vld [vmem:[%s2478_s2 + $0x18] sm:$0xff] }
   0x3   :  { %v31_v7 = vld [vmem:[%s2477_s1] sm:$0xff]  ;;  %v559_v17 = vld [vmem:[%s2478_s2 + $0x8] sm:$0xff]  ;;  %v1809_v20 = vmul.f32 %v1774_v4, %v1765_v3  ;;  %v560_v29 = vld [vmem:[%s2478_s2 + $0x10] sm:$0xff] }
   0x4   :  { %183 = vrot.lane.b32.xlu2 %v41_v6, %s1694_s16  ;;  %590 = vmatpush.msra.mxu0 %v31_v7  ;;  %v558_v9 = vld [vmem:[%s2478_s2] sm:$0xff] }
   0x5   :  { %1542 = vmatpush.msra.mxu3 %v31_v7  ;;  %1506 = vmatmul.msk.f32.vlgmr.msra.gmra.mxu0 %vm562_vm0, %v558_v9 }
   0x6   :  { %1509 = vmatmul.msk.f32.vlgmr.msra.gmra.mxu3 %vm562_vm0, %v561_v10 }
   0xa   :  { %51 = vrot.lane.b32.xlu0 %v1760_v2, %s1693_s9  ;;  %47 = vrot.lane.b32.xlu1 %v1765_v3, %s1693_s9 }
   0xd   :  { %1507 = vmatmul.msk.f32.gmra.mxu0 %vm562_vm0, %v559_v17 }
  0x12   :  { %185 = vrot.lane.b32.xlu0 %v42_v5, %s1694_s16 }
  0x15   :  { %1508 = vmatmul.msk.f32.gmra.mxu0 %vm562_vm0, %v560_v29 }
  0x74   :  { %v54_v11 = vpop.permute.xlu0 %53  ;;  %v50_v12 = vpop.permute.xlu1 %49 }
  0x75   :  { %v1797_v13 = vadd.f32 %v54_v11, %v42_v5  ;;  %v1800_v14 = vadd.f32 %v50_v12, %v1787_v8 }
  0x77   :  { %v66_v15 = vand.u32 2147483647, %v1797_v13  ;;  %v64_v16 = vand.u32 2147483647, %v1800_v14  ;;  %vm146_vm11 = vcmp.ge.f32.partialorder %v1797_v13, 0.0  ;;  %vm144_vm12 = vcmp.ge.f32.partialorder %v1800_v14, 0.0 }
  0x79   :  { %v70_v18 = vsub.f32 0.0, %v66_v15  ;;  %v68_v19 = vsub.f32 0.0, %v64_v16 }
  0x7b   :  { %v77_v21 = vmul.f32 1.442695, %v70_v18  ;;  %v73_v22 = vmul.f32 1.442695, %v68_v19 }
  0x7c   :  { %v52_v23 = vpop.permute.xlu0 %51  ;;  %v48_v24 = vpop.permute.xlu1 %47 }
  0x7d   :  { %1567 = vpow2.f32 %v77_v21  ;;  %v1812_v25 = vadd.f32 %v52_v23, %v41_v6  ;;  %v1815_v26 = vadd.f32 %v48_v24, %v1809_v20 }
  0x7e   :  { %1569 = vpow2.f32 %v73_v22 }
  0x7f   :  { %v65_v27 = vand.u32 2147483647, %v1812_v25  ;;  %v63_v28 = vand.u32 2147483647, %v1815_v26 }
  0x81   :  { %v69_v30 = vsub.f32 0.0, %v65_v27  ;;  %v67_v31 = vsub.f32 0.0, %v63_v28 }
  0x83   :  { %v1568_v32 = vpop.eup %1567  ;;  %v75_v33 = vmul.f32 1.442695, %v69_v30  ;;  %v71_v36 = vmul.f32 1.442695, %v67_v31 }
  0x84   :  { %v1570_v34 = vpop.eup %1569  ;;  %v82_v35 = vadd.f32 1.0, %v1568_v32 }
  0x85   :  { %v80_v37 = vadd.f32 1.0, %v1570_v34  ;;  %1571 = vpow2.f32 %v75_v33 }
  0x86   :  { %1573 = vrcp.f32 %v82_v35  ;;  %vm133_vm1 = vweird.f32 %v82_v35  ;;  %v139_v45 = vand.u32 2147483648, %v82_v35  ;;  %v137_v49 = vand.u32 2147483647, %v82_v35 }
  0x87   :  { %1575 = vrcp.f32 %v80_v37  ;;  %v107_v51 = vand.u32 2147483647, %v80_v37  ;;  %v109_v53 = vand.u32 2147483648, %v80_v37  ;;  %vm103_vm6 = vweird.f32 %v80_v37 }
  0x88   :  { %1577 = vpow2.f32 %v71_v36  ;;  %v140_v55 = vor.u32 1.1754944e-38, %v139_v45  ;;  %vm138_vm5 = vcmp.eq.f32.partialorder %v137_v49, 8.507059e+37 }
  0x89   :  { %vm108_vm7 = vcmp.eq.f32.partialorder %v107_v51, 8.507059e+37  ;;  %v110_v61 = vor.u32 1.1754944e-38, %v109_v53 }
  0x8b   :  { %v1825_v39 = vpop.eup %1571 }
  0x8c   :  { %v1574_v40 = vpop.eup %1573  ;;  %v81_v41 = vadd.f32 1.0, %v1825_v39 }
  0x8d   :  { %v1576_v42 = vpop.eup %1575  ;;  %v129_v43 = vmul.f32 %v1574_v40, %v82_v35  ;;  %vm134_vm2 = vweird.f32 %v1574_v40 }
  0x8e   :  { %v1828_v44 = vpop.eup %1577  ;;  %1579 = vrcp.f32 %v81_v41  ;;  %v99_v46 = vmul.f32 %v1576_v42, %v80_v37  ;;  %vm1831_vm3 = vmor %vm133_vm1, %vm134_vm2  ;;  %vm104_vm4 = vweird.f32 %v1576_v42  ;;  %vm118_vm9 = vweird.f32 %v81_v41 }
  0x8f   :  { %v79_v47 = vadd.f32 1.0, %v1828_v44  ;;  %v130_v48 = vsub.f32 1.0, %v129_v43  ;;  %vm105_vm8 = vmor %vm103_vm6, %vm104_vm4  ;;  %v122_v6 = vand.u32 2147483647, %v81_v41  ;;  %v124_v7 = vand.u32 2147483648, %v81_v41 }
  0x90   :  { %v100_v50 = vsub.f32 1.0, %v99_v46  ;;  %vm145_vm2 = vcmp.ge.f32.partialorder %v1812_v25, 0.0  ;;  %vm143_vm4 = vcmp.ge.f32.partialorder %v1815_v26, 0.0  ;;  %v1855_v25 = vld [vmem:[%s2475_s7 + $0x38] sm:$0xff]  ;;  %v184_v26 = vpop.permute.xlu2 %183 }
  0x91   :  { %1581 = vrcp.f32 %v79_v47  ;;  %v131_v52 = vmul.f32 %v1574_v40, %v130_v48  ;;  %v125_v21 = vor.u32 1.1754944e-38, %v124_v7  ;;  %vm123_vm14 = vcmp.eq.f32.partialorder %v122_v6, 8.507059e+37 }
  0x92   :  { %v101_v56 = vmul.f32 %v1576_v42, %v100_v50  ;;  %v94_v24 = vand.u32 2147483648, %v79_v47  ;;  %v92_v13 = vand.u32 2147483647, %v79_v47  ;;  %vm88_vm0 = vweird.f32 %v79_v47 }
  0x93   :  { %v132_v57 = vadd.f32 %v1574_v40, %v131_v52  ;;  %v203_v45 = vmul.f32 %v1855_v25, %v1774_v4 }
  0x94   :  { %v1580_v58 = vpop.eup %1579  ;;  %v102_v59 = vadd.f32 %v1576_v42, %v101_v56  ;;  %v95_v31 = vor.u32 1.1754944e-38, %v94_v24 }
  0x95   :  { %v136_v60 = vsel %vm1831_vm3, %v1574_v40, %v132_v57  ;;  %v114_v62 = vmul.f32 %v1580_v58, %v81_v41  ;;  %vm119_vm10 = vweird.f32 %v1580_v58  ;;  %vm93_vm3 = vcmp.eq.f32.partialorder %v92_v13, 8.507059e+37 }
  0x96   :  { %v141_v63 = vsel %vm138_vm5, %v140_v55, %v136_v60  ;;  %v106_v5 = vsel %vm105_vm8, %v1576_v42, %v102_v59  ;;  %vm120_vm13 = vmor %vm118_vm9, %vm119_vm10 }
  0x97   :  { %v1582_v9 = vpop.eup %1581  ;;  %v150_v10 = vmul.f32 %v1568_v32, %v141_v63  ;;  %v111_v11 = vsel %vm108_vm7, %v110_v61, %v106_v5  ;;  %v115_v12 = vsub.f32 1.0, %v114_v62 }
  0x98   :  { %v148_v15 = vmul.f32 %v1570_v34, %v111_v11  ;;  %v84_v16 = vmul.f32 %v1582_v9, %v79_v47  ;;  %vm89_vm15 = vweird.f32 %v1582_v9 }
  0x99   :  { %v154_v17 = vsel %vm146_vm11, %v141_v63, %v150_v10  ;;  %v116_v18 = vmul.f32 %v1580_v58, %v115_v12  ;;  %vm90_vm1 = vmor %vm88_vm0, %vm89_vm15 }
  0x9a   :  { %165 = vrot.lane.b32.xlu2 %v154_v17, %s1693_s9  ;;  %v152_v19 = vsel %vm144_vm12, %v111_v11, %v148_v15  ;;  %v85_v22 = vsub.f32 1.0, %v84_v16 }
  0x9b   :  { %161 = vrot.lane.b32.xlu1 %v152_v19, %s1693_s9  ;;  %v117_v23 = vadd.f32 %v1580_v58, %v116_v18 }
  0x9c   :  { %v86_v27 = vmul.f32 %v1582_v9, %v85_v22  ;;  %v601_v22 = vpop.f32.mrf.mxu3 }
  0x9d   :  { %v121_v28 = vsel %vm120_vm13, %v1580_v58, %v117_v23 }
  0x9e   :  { %v126_v29 = vsel %vm123_vm14, %v125_v21, %v121_v28  ;;  %v87_v14 = vadd.f32 %v1582_v9, %v86_v27 }
  0x9f   :  { %v149_v30 = vmul.f32 %v1825_v39, %v126_v29  ;;  %v186_v39 = vpop.permute.xlu0 %185 }
  0xa0   :  { %v91_v32 = vsel %vm90_vm1, %v1582_v9, %v87_v14  ;;  %v1899_v9 = vpop.f32.mrf.mxu0 }
  0xa1   :  { %v153_v33 = vsel %vm145_vm2, %v126_v29, %v149_v30  ;;  %v96_v34 = vsel %vm93_vm3, %v95_v31, %v91_v32 }
  0xa2   :  { %163 = vrot.lane.b32.xlu2 %v153_v33, %s1693_s9  ;;  %v147_v35 = vmul.f32 %v1828_v44, %v96_v34 }
  0xa3   :  { %181 = vrot.lane.b32.xlu1 %v1787_v8, %s1694_s16  ;;  %v1862_v8 = vld [vmem:[%s2475_s7 + $0x20] sm:$0xff] }
  0xa4   :  { %v151_v36 = vsel %vm143_vm4, %v96_v34, %v147_v35  ;;  %v1896_v58 = vmul.f32 %v1862_v8, %v1774_v4 }
  0xa5   :  { %159 = vrot.lane.b32.xlu0 %v151_v36, %s1693_s9 }
  0xa8   :  { %v1901_v21 = vpop.f32.mrf.mxu0 }
  0xaa   :  { %179 = vrot.lane.b32.xlu2 %v1809_v20, %s1694_s16  ;;  %v1696_v20 = vmov 0  }
  0xab   :  { %613 = vperm.xlu1 %1553, %v153_v33   ;;  %1554 = vset.pattern.permute.xlu2 %v1696_v20 }
  0xad   :  { %617 = vperm.xlu0 %1552, %v154_v17  }
  0xb3   :  { %609 = vperm.xlu1 %1553, %v152_v19  }
  0xb5   :  { %605 = vperm.xlu0 %1552, %v151_v36  }
  0xbb   :  { %1555 = vset.pattern.permute.xlu1 %v1696_v20 }
  0xbd   :  { %214 = vrot.lane.b32.xlu0 %v1855_v25, %s1693_s9 }
  0xc5   :  { %208 = vrot.lane.b32.xlu0 %v1862_v8, %s1693_s9 }
  0xcd   :  { %346 = vrot.lane.b32.xlu0 %v203_v45, %s1694_s16 }
  0xf4   :  { %v166_v37 = vpop.permute.xlu2 %165 }
  0xf5   :  { %v174_v40 = vmul.f32 %v166_v37, %v1746_v0 }
  0xf7   :  { %v194_v41 = vadd.f32 %v186_v39, %v174_v40 }
  0xf9   :  { %641 = vperm.xlu2 %1554, %v194_v41   ;;  %v598_v41 = vpop.f32.mrf.mxu0 }
  0xfc   :  { %v164_v42 = vpop.permute.xlu2 %163 }
  0xfd   :  { %v173_v43 = vmul.f32 %v164_v42, %v1760_v2  ;;  %v1878_v2 = vld [vmem:[%s2475_s7 + $0x30] sm:$0xff] }
  0xff   :  { %v193_v44 = vadd.f32 %v184_v26, %v173_v43 }
 0x101   :  { %636 = vperm.xlu2 %1554, %v193_v44  }
 0x104   :  { %v180_v51 = vpop.permute.xlu2 %179 }
 0x10d   :  { %v162_v46 = vpop.permute.xlu1 %161 }
 0x10e   :  { %v172_v47 = vmul.f32 %v162_v46, %v1751_v1  ;;  %v1887_v1 = vld [vmem:[%s2475_s7 + $0x28] sm:$0xff] }
 0x115   :  { %v182_v48 = vpop.permute.xlu1 %181 }
 0x116   :  { %v192_v49 = vadd.f32 %v182_v48, %v172_v47 }
 0x117   :  { %v160_v50 = vpop.permute.xlu0 %159 }
 0x118   :  { %v171_v0 = vmul.f32 %v160_v50, %v1765_v3  ;;  %631 = vperm.xlu1 %1555, %v192_v49  }
 0x11a   :  { %v191_v52 = vadd.f32 %v180_v51, %v171_v0 }
 0x11c   :  { %626 = vperm.xlu2 %1554, %v191_v52  }
 0x11d   :  { %v1908_v42 = vpop.permute.xlu1 %613 }
 0x11e   :  { %v622_v46 = vmul.f32 %v1908_v42, %v598_v41 }
 0x11f   :  { %v1880_v53 = vpop.permute.xlu0 %617 }
 0x120   :  { %212 = vrot.lane.b32.xlu1 %v1878_v2, %s1693_s9  ;;  %v623_v13 = vmul.f32 %v1880_v53, %v601_v22 }
 0x121   :  { %1556 = vset.pattern.permute.xlu1 %v1695_v38 }
 0x124   :  { %210 = vrot.lane.b32.xlu2 %v1887_v1, %s1693_s9 }
 0x127   :  { %v1892_v3 = vpop.permute.xlu0 %605 }
 0x12f   :  { %v215_v54 = vpop.permute.xlu0 %214 }
 0x130   :  { %v223_v55 = vadd.f32 %v215_v54, %v203_v45 }
 0x132   :  { %v227_v56 = vand.u32 2147483647, %v223_v55  ;;  %vm307_vm9 = vcmp.ge.f32.partialorder %v223_v55, 0.0 }
 0x134   :  { %v231_v57 = vsub.f32 0.0, %v227_v56 }
 0x136   :  { %v238_v59 = vmul.f32 1.442695, %v231_v57 }
 0x137   :  { %v209_v60 = vpop.permute.xlu0 %208 }
 0x138   :  { %1583 = vpow2.f32 %v238_v59  ;;  %v220_v61 = vadd.f32 %v209_v60, %v1896_v58 }
 0x13a   :  { %v224_v62 = vand.u32 2147483647, %v220_v61  ;;  %vm304_vm14 = vcmp.ge.f32.partialorder %v220_v61, 0.0 }
 0x13c   :  { %v228_v63 = vsub.f32 0.0, %v224_v62 }
 0x13e   :  { %v1584_v5 = vpop.eup %1583  ;;  %v232_v6 = vmul.f32 1.442695, %v228_v63 }
 0x13f   :  { %v243_v7 = vadd.f32 1.0, %v1584_v5 }
 0x140   :  { %1585 = vpow2.f32 %v232_v6 }
 0x141   :  { %1587 = vrcp.f32 %v243_v7  ;;  %v300_v16 = vand.u32 2147483648, %v243_v7  ;;  %vm294_vm5 = vweird.f32 %v243_v7  ;;  %v298_v18 = vand.u32 2147483647, %v243_v7 }
 0x143   :  { %v301_v23 = vor.u32 1.1754944e-38, %v300_v16  ;;  %vm299_vm8 = vcmp.eq.f32.partialorder %v298_v18, 8.507059e+37 }
 0x146   :  { %v1586_v10 = vpop.eup %1585 }
 0x147   :  { %v1588_v11 = vpop.eup %1587  ;;  %v240_v12 = vadd.f32 1.0, %v1586_v10 }
 0x148   :  { %v290_v15 = vmul.f32 %v1588_v11, %v243_v7  ;;  %vm295_vm6 = vweird.f32 %v1588_v11 }
 0x149   :  { %1589 = vrcp.f32 %v240_v12  ;;  %vm296_vm7 = vmor %vm294_vm5, %vm295_vm6  ;;  %vm249_vm10 = vweird.f32 %v240_v12  ;;  %v255_v30 = vand.u32 2147483648, %v240_v12  ;;  %v253_v33 = vand.u32 2147483647, %v240_v12 }
 0x14a   :  { %v291_v17 = vsub.f32 1.0, %v290_v15 }
 0x14b   :  { %v256_v37 = vor.u32 1.1754944e-38, %v255_v30  ;;  %vm254_vm13 = vcmp.eq.f32.partialorder %v253_v33, 8.507059e+37 }
 0x14c   :  { %v292_v19 = vmul.f32 %v1588_v11, %v291_v17 }
 0x14e   :  { %v293_v24 = vadd.f32 %v1588_v11, %v292_v19 }
 0x14f   :  { %v1590_v27 = vpop.eup %1589 }
 0x150   :  { %v297_v28 = vsel %vm296_vm7, %v1588_v11, %v293_v24  ;;  %v245_v29 = vmul.f32 %v1590_v27, %v240_v12  ;;  %vm250_vm11 = vweird.f32 %v1590_v27 }
 0x151   :  { %v302_v14 = vsel %vm299_vm8, %v301_v23, %v297_v28  ;;  %vm251_vm12 = vmor %vm249_vm10, %vm250_vm11 }
 0x152   :  { %v311_v31 = vmul.f32 %v1584_v5, %v302_v14  ;;  %v246_v32 = vsub.f32 1.0, %v245_v29  ;;  %v620_v29 = vmul.f32 %v1892_v3, %v1899_v9 }
 0x153   :  { %v642_v34 = vpop.permute.xlu2 %641 }
 0x154   :  { %v1904_v35 = vadd.f32 %v642_v34, %v623_v13  ;;  %v315_v36 = vsel %vm307_vm9, %v302_v14, %v311_v31  ;;  %v247_v26 = vmul.f32 %v1590_v27, %v246_v32 }
 0x155   :  { %326 = vrot.lane.b32.xlu1 %v315_v36, %s1693_s9 }
 0x156   :  { %v651_v39 = vand.u32 2147483647, %v1904_v35  ;;  %v248_v40 = vadd.f32 %v1590_v27, %v247_v26  ;;  %v743_v12 = vmax.f32 %v1904_v35, 0.0  ;;  %vm731_vm3 = vcmp.ge.f32.partialorder %v1904_v35, 0.0 }
 0x158   :  { %v655_v43 = vsub.f32 0.0, %v651_v39  ;;  %v252_v44 = vsel %vm251_vm12, %v1590_v27, %v248_v40 }
 0x159   :  { %v257_v45 = vsel %vm254_vm13, %v256_v37, %v252_v44 }
 0x15a   :  { %v662_v47 = vmul.f32 1.442695, %v655_v43  ;;  %v308_v48 = vmul.f32 %v1586_v10, %v257_v45 }
 0x15b   :  { %v637_v49 = vpop.permute.xlu2 %636 }
 0x15c   :  { %1591 = vpow2.f32 %v662_v47  ;;  %v1911_v50 = vsel %vm304_vm14, %v257_v45, %v308_v48  ;;  %v1913_v51 = vadd.f32 %v637_v49, %v622_v46 }
 0x15d   :  { %320 = vrot.lane.b32.xlu0 %v1911_v50, %s1693_s9 }
 0x15e   :  { %v650_v0 = vand.u32 2147483647, %v1913_v51  ;;  %vm730_vm10 = vcmp.ge.f32.partialorder %v1913_v51, 0.0 }
 0x160   :  { %v654_v52 = vsub.f32 0.0, %v650_v0  ;;  %v1938_v0 = vmul.f32 %v1887_v1, %v1774_v4 }
 0x162   :  { %v1592_v54 = vpop.eup %1591  ;;  %v660_v55 = vmul.f32 1.442695, %v654_v52 }
 0x163   :  { %v667_v56 = vadd.f32 1.0, %v1592_v54  ;;  %v774_v57 = vmul.f32 -0.5, %v1592_v54  ;;  %v777_v61 = vand.u32 2147483647, %v1592_v54 }
 0x164   :  { %1593 = vpow2.f32 %v660_v55 }
 0x165   :  { %843 = vperm.xlu0 %1552, %v315_v36   ;;  %1595 = vrcp.f32 %v667_v56  ;;  %v775_v59 = vadd.f32 1.0, %v774_v57  ;;  %vm778_vm15 = vcmp.lt.f32.partialorder %v777_v61, 0.0004427343  ;;  %v724_v18 = vand.u32 2147483648, %v667_v56 }
 0x166   :  { %1597 = vlog2.f32 %v667_v56  ;;  %v722_v23 = vand.u32 2147483647, %v667_v56  ;;  %vm718_vm1 = vweird.f32 %v667_v56  ;;  %v742_v36 = vmax.f32 %v1913_v51, 0.0 }
 0x167   :  { %v776_v10 = vmul.f32 %v1592_v54, %v775_v59  ;;  %v725_v30 = vor.u32 1.1754944e-38, %v724_v18 }
 0x168   :  { %vm723_vm4 = vcmp.eq.f32.partialorder %v722_v23, 8.507059e+37 }
 0x16a   :  { %v1918_v60 = vpop.eup %1593 }
 0x16b   :  { %v1596_v62 = vpop.eup %1595  ;;  %v666_v63 = vadd.f32 1.0, %v1918_v60  ;;  %v765_v11 = vmul.f32 -0.5, %v1918_v60  ;;  %v768_v24 = vand.u32 2147483647, %v1918_v60 }
 0x16c   :  { %v1598_v5 = vpop.eup %1597  ;;  %v714_v6 = vmul.f32 %v1596_v62, %v667_v56  ;;  %vm719_vm0 = vweird.f32 %v1596_v62 }
 0x16d   :  { %v773_v7 = vmul.f32 0.6931472, %v1598_v5  ;;  %1599 = vrcp.f32 %v666_v63  ;;  %v766_v19 = vadd.f32 1.0, %v765_v11  ;;  %vm720_vm2 = vmor %vm718_vm1, %vm719_vm0  ;;  %vm769_vm5 = vcmp.lt.f32.partialorder %v768_v24, 0.0004427343 }
 0x16e   :  { %1601 = vlog2.f32 %v666_v63  ;;  %v715_v16 = vsub.f32 1.0, %v714_v6  ;;  %v709_v9 = vand.u32 2147483648, %v666_v63  ;;  %v707_v45 = vand.u32 2147483647, %v666_v63 }
 0x16f   :  { %v779_v15 = vsel %vm778_vm15, %v776_v10, %v773_v7  ;;  %v767_v32 = vmul.f32 %v1918_v60, %v766_v19  ;;  %vm703_vm7 = vweird.f32 %v666_v63  ;;  %v1960_v19 = vmul.f32 %v1878_v2, %v1774_v4 }
 0x170   :  { %v783_v17 = vadd.f32 %v779_v15, %v743_v12  ;;  %v716_v22 = vmul.f32 %v1596_v62, %v715_v16  ;;  %v710_v52 = vor.u32 1.1754944e-38, %v709_v9  ;;  %vm708_vm9 = vcmp.eq.f32.partialorder %v707_v45, 8.507059e+37 }
 0x172   :  { %813 = vmatpush.msra.mxu1 %v783_v17  ;;  %1543 = vmatpush.msra.mxu2 %v783_v17  ;;  %v717_v13 = vadd.f32 %v1596_v62, %v716_v22 }
 0x173   :  { %v1600_v27 = vpop.eup %1599 }
 0x174   :  { %v1602_v28 = vpop.eup %1601  ;;  %v699_v14 = vmul.f32 %v1600_v27, %v666_v63  ;;  %v721_v33 = vsel %vm720_vm2, %v1596_v62, %v717_v13  ;;  %vm704_vm6 = vweird.f32 %v1600_v27  ;;  %v1948_v63 = vpop.permute.xlu1 %609 }
 0x175   :  { %v764_v31 = vmul.f32 0.6931472, %v1602_v28  ;;  %v726_v37 = vsel %vm723_vm4, %v725_v30, %v721_v33  ;;  %vm705_vm8 = vmor %vm703_vm7, %vm704_vm6 }
 0x176   :  { %v627_v34 = vpop.permute.xlu2 %626  ;;  %v700_v26 = vsub.f32 1.0, %v699_v14  ;;  %v735_v41 = vmul.f32 %v1592_v54, %v726_v37 }
 0x177   :  { %v1929_v39 = vadd.f32 %v627_v34, %v620_v29  ;;  %v770_v40 = vsel %vm769_vm5, %v767_v32, %v764_v31 }
 0x178   :  { %v782_v43 = vadd.f32 %v770_v40, %v742_v36  ;;  %v701_v44 = vmul.f32 %v1600_v27, %v700_v26  ;;  %v1934_v47 = vsel %vm731_vm3, %v726_v37, %v735_v41 }
 0x179   :  { %v648_v46 = vand.u32 2147483647, %v1929_v39  ;;  %vm728_vm15 = vcmp.ge.f32.partialorder %v1929_v39, 0.0 }
 0x17a   :  { %814 = vmatpush.msra.mxu1 %v782_v43  ;;  %1544 = vmatpush.msra.mxu2 %v782_v43  ;;  %v702_v48 = vadd.f32 %v1600_v27, %v701_v44 }
 0x17b   :  { %v652_v49 = vsub.f32 0.0, %v648_v46 }
 0x17c   :  { %v706_v54 = vsel %vm705_vm8, %v1600_v27, %v702_v48  ;;  %vm788_vm8 = vcmask 261120  }
 0x17d   :  { %v656_v55 = vmul.f32 1.442695, %v652_v49  ;;  %v711_v56 = vsel %vm708_vm9, %v710_v52, %v706_v54 }
 0x17e   :  { %v211_v57 = vpop.permute.xlu2 %210  ;;  %v734_v35 = vmul.f32 %v1918_v60, %v711_v56  ;;  %v621_v60 = vmul.f32 %v1948_v63, %v1901_v21 }
 0x17f   :  { %1603 = vpow2.f32 %v656_v55  ;;  %v1942_v59 = vadd.f32 %v211_v57, %v1938_v0 }
 0x180   :  { %v1945_v61 = vsel %vm730_vm10, %v711_v56, %v734_v35 }
 0x181   :  { %v225_v62 = vand.u32 2147483647, %v1942_v59  ;;  %vm305_vm4 = vcmp.ge.f32.partialorder %v1942_v59, 0.0 }
 0x183   :  { %v229_v5 = vsub.f32 0.0, %v225_v62 }
 0x185   :  { %v1950_v6 = vpop.eup %1603  ;;  %v234_v7 = vmul.f32 1.442695, %v229_v5 }
 0x186   :  { %v664_v10 = vadd.f32 1.0, %v1950_v6  ;;  %v747_v52 = vmul.f32 -0.5, %v1950_v6 }
 0x187   :  { %1605 = vpow2.f32 %v234_v7 }
 0x188   :  { %1607 = vrcp.f32 %v664_v10  ;;  %v677_v13 = vand.u32 2147483647, %v664_v10  ;;  %v679_v21 = vand.u32 2147483648, %v664_v10  ;;  %vm673_vm12 = vweird.f32 %v664_v10 }
 0x189   :  { %v748_v5 = vadd.f32 1.0, %v747_v52 }
 0x18a   :  { %v632_v11 = vpop.permute.xlu1 %631  ;;  %v680_v32 = vor.u32 1.1754944e-38, %v679_v21  ;;  %vm678_vm14 = vcmp.eq.f32.partialorder %v677_v13, 8.507059e+37 }
 0x18b   :  { %v1955_v12 = vadd.f32 %v632_v11, %v621_v60  ;;  %v750_v11 = vand.u32 2147483647, %v1950_v6 }
 0x18d   :  { %v1606_v51 = vpop.eup %1605  ;;  %v649_v15 = vand.u32 2147483647, %v1955_v12  ;;  %v741_v13 = vmax.f32 %v1955_v12, 0.0  ;;  %vm751_vm6 = vcmp.lt.f32.partialorder %v750_v11, 0.0004427343 }
 0x18e   :  { %v1608_v16 = vpop.eup %1607  ;;  %v241_v17 = vadd.f32 1.0, %v1606_v51 }
 0x18f   :  { %v653_v18 = vsub.f32 0.0, %v649_v15  ;;  %v669_v22 = vmul.f32 %v1608_v16, %v664_v10  ;;  %vm674_vm11 = vweird.f32 %v1608_v16 }
 0x190   :  { %1609 = vrcp.f32 %v241_v17  ;;  %vm675_vm13 = vmor %vm673_vm12, %vm674_vm11  ;;  %v268_v43 = vand.u32 2147483647, %v241_v17  ;;  %v270_v44 = vand.u32 2147483648, %v241_v17  ;;  %vm264_vm1 = vweird.f32 %v241_v17 }
 0x191   :  { %v658_v23 = vmul.f32 1.442695, %v653_v18  ;;  %v670_v24 = vsub.f32 1.0, %v669_v22 }
 0x192   :  { %v213_v27 = vpop.permute.xlu1 %212  ;;  %v271_v55 = vor.u32 1.1754944e-38, %v270_v44  ;;  %vm269_vm3 = vcmp.eq.f32.partialorder %v268_v43, 8.507059e+37 }
 0x193   :  { %1611 = vpow2.f32 %v658_v23  ;;  %v1963_v28 = vadd.f32 %v213_v27, %v1960_v19  ;;  %v671_v29 = vmul.f32 %v1608_v16, %v670_v24  ;;  %v749_v27 = vmul.f32 %v1950_v6, %v748_v5 }
 0x194   :  { %1613 = vlog2.f32 %v664_v10 }
 0x195   :  { %v226_v14 = vand.u32 2147483647, %v1963_v28  ;;  %v672_v30 = vadd.f32 %v1608_v16, %v671_v29  ;;  %v740_v29 = vmax.f32 %v1929_v39, 0.0 }
 0x196   :  { %v1610_v31 = vpop.eup %1609 }
 0x197   :  { %v230_v33 = vsub.f32 0.0, %v226_v14  ;;  %v260_v34 = vmul.f32 %v1610_v31, %v241_v17  ;;  %v676_v36 = vsel %vm675_vm13, %v1608_v16, %v672_v30  ;;  %vm265_vm0 = vweird.f32 %v1610_v31 }
 0x198   :  { %v681_v26 = vsel %vm678_vm14, %v680_v32, %v676_v36  ;;  %vm266_vm2 = vmor %vm264_vm1, %vm265_vm0  ;;  %vm729_vm14 = vcmp.ge.f32.partialorder %v1955_v12, 0.0  ;;  %vm306_vm1 = vcmp.ge.f32.partialorder %v1963_v28, 0.0 }
 0x199   :  { %v1966_v37 = vpop.eup %1611  ;;  %v236_v40 = vmul.f32 1.442695, %v230_v33  ;;  %v261_v9 = vsub.f32 1.0, %v260_v34  ;;  %v732_v41 = vmul.f32 %v1950_v6, %v681_v26  ;;  %v784_v6 = vld [vmem:[%s2479_s3] sm:$0xff] }
 0x19a   :  { %v1970_v45 = vadd.f32 1.0, %v1966_v37  ;;  %v756_v49 = vmul.f32 -0.5, %v1966_v37  ;;  %v1614_v56 = vpop.eup %1613  ;;  %v759_v60 = vand.u32 2147483647, %v1966_v37 }
 0x19b   :  { %1615 = vpow2.f32 %v236_v40  ;;  %v262_v46 = vmul.f32 %v1610_v31, %v261_v9  ;;  %v1973_v48 = vsel %vm728_vm15, %v681_v26, %v732_v41  ;;  %v746_v17 = vmul.f32 0.6931472, %v1614_v56  ;;  %v787_v26 = vld [vmem:[%s2479_s3 + $0x18] sm:$0xff] }
 0x19c   :  { %1617 = vrcp.f32 %v1970_v45  ;;  %v757_v62 = vadd.f32 1.0, %v756_v49  ;;  %vm760_vm5 = vcmp.lt.f32.partialorder %v759_v60, 0.0004427343  ;;  %v694_v30 = vand.u32 2147483648, %v1970_v45  ;;  %v2031_v60 = vld [vmem:[%s2475_s7 + $0x58] sm:$0xff] }
 0x19d   :  { %v263_v54 = vadd.f32 %v1610_v31, %v262_v46  ;;  %1619 = vlog2.f32 %v1970_v45  ;;  %v752_v14 = vsel %vm751_vm6, %v749_v27, %v746_v17  ;;  %v692_v33 = vand.u32 2147483647, %v1970_v45  ;;  %v2048_v27 = vld [vmem:[%s2475_s7 + $0x40] sm:$0xff] }
 0x19e   :  { %v780_v34 = vadd.f32 %v752_v14, %v740_v29  ;;  %vm688_vm9 = vweird.f32 %v1970_v45  ;;  %v695_v40 = vor.u32 1.1754944e-38, %v694_v30 }
 0x19f   :  { %v267_v57 = vsel %vm266_vm2, %v1610_v31, %v263_v54  ;;  %vm693_vm11 = vcmp.eq.f32.partialorder %v692_v33, 8.507059e+37 }
 0x1a0   :  { %v272_v35 = vsel %vm269_vm3, %v271_v55, %v267_v57  ;;  %v785_v55 = vld [vmem:[%s2479_s3 + $0x8] sm:$0xff] }
 0x1a1   :  { %v1979_v7 = vpop.eup %1615  ;;  %v309_v10 = vmul.f32 %v1606_v51, %v272_v35  ;;  %v758_v51 = vmul.f32 %v1966_v37, %v757_v62  ;;  %v786_v62 = vld [vmem:[%s2479_s3 + $0x10] sm:$0xff] }
 0x1a2   :  { %v1618_v15 = vpop.eup %1617  ;;  %v242_v16 = vadd.f32 1.0, %v1979_v7 }
 0x1a3   :  { %v1620_v18 = vpop.eup %1619  ;;  %v313_v22 = vsel %vm305_vm4, %v272_v35, %v309_v10  ;;  %v684_v23 = vmul.f32 %v1618_v15, %v1970_v45  ;;  %vm689_vm7 = vweird.f32 %v1618_v15 }
 0x1a4   :  { %1621 = vrcp.f32 %v242_v16  ;;  %322 = vrot.lane.b32.xlu1 %v313_v22, %s1693_s9  ;;  %835 = vperm.xlu0 %1552, %v313_v22   ;;  %v755_v24 = vmul.f32 0.6931472, %v1620_v18  ;;  %vm690_vm10 = vmor %vm688_vm9, %vm689_vm7  ;;  %vm279_vm12 = vweird.f32 %v242_v16  ;;  %v285_v43 = vand.u32 2147483648, %v242_v16 }
 0x1a5   :  { %v685_v59 = vsub.f32 1.0, %v684_v23  ;;  %v283_v46 = vand.u32 2147483647, %v242_v16 }
 0x1a6   :  { %v761_v21 = vsel %vm760_vm5, %v758_v51, %v755_v24 }
 0x1a7   :  { %v781_v31 = vadd.f32 %v761_v21, %v741_v13  ;;  %v686_v32 = vmul.f32 %v1618_v15, %v685_v59  ;;  %vm284_vm0 = vcmp.eq.f32.partialorder %v283_v46, 8.507059e+37 }
 0x1a9   :  { %815 = vmatpush.msra.mxu1 %v781_v31  ;;  %1545 = vmatpush.msra.mxu2 %v781_v31  ;;  %v687_v36 = vadd.f32 %v1618_v15, %v686_v32 }
 0x1aa   :  { %v1622_v39 = vpop.eup %1621 }
 0x1ab   :  { %816 = vmatpush.msra.mxu1 %v780_v34  ;;  %1546 = vmatpush.msra.mxu2 %v780_v34  ;;  %v275_v9 = vmul.f32 %v1622_v39, %v242_v16  ;;  %v691_v41 = vsel %vm690_vm10, %v1618_v15, %v687_v36  ;;  %vm280_vm13 = vweird.f32 %v1622_v39 }
 0x1ac   :  { %342 = vrot.lane.b32.xlu1 %v1938_v0, %s1694_s16  ;;  %1510 = vmatmul.msk.f32.vlgmr.msra.gmra.mxu1 %vm788_vm8, %v784_v6  ;;  %v696_v44 = vsel %vm693_vm11, %v695_v40, %v691_v41  ;;  %vm281_vm15 = vmor %vm279_vm12, %vm280_vm13  ;;  %v286_v0 = vor.u32 1.1754944e-38, %v285_v43 }
 0x1ad   :  { %1513 = vmatmul.msk.f32.vlgmr.msra.gmra.mxu2 %vm788_vm8, %v787_v26  ;;  %v276_v45 = vsub.f32 1.0, %v275_v9  ;;  %1559 = vset.pattern.permute.xlu0 %v1696_v20  ;;  %v733_v49 = vmul.f32 %v1966_v37, %v696_v44 }
 0x1af   :  { %v277_v52 = vmul.f32 %v1622_v39, %v276_v45  ;;  %v2007_v54 = vsel %vm729_vm14, %v696_v44, %v733_v49 }
 0x1b1   :  { %v278_v56 = vadd.f32 %v1622_v39, %v277_v52 }
 0x1b3   :  { %v282_v57 = vsel %vm281_vm15, %v1622_v39, %v278_v56 }
 0x1b4   :  { %1511 = vmatmul.msk.f32.gmra.mxu1 %vm788_vm8, %v785_v55  ;;  %v287_v35 = vsel %vm284_vm0, %v286_v0, %v282_v57 }
 0x1b5   :  { %v310_v37 = vmul.f32 %v1979_v7, %v287_v35  ;;  %v347_v7 = vpop.permute.xlu0 %346 }
 0x1b7   :  { %v314_v12 = vsel %vm306_vm1, %v287_v35, %v310_v37 }
 0x1b8   :  { %324 = vrot.lane.b32.xlu2 %v314_v12, %s1693_s9  ;;  %839 = vperm.xlu1 %1556, %v314_v12  }
 0x1bc   :  { %1512 = vmatmul.msk.f32.gmra.mxu1 %vm788_vm8, %v786_v62 }
 0x1c0   :  { %344 = vrot.lane.b32.xlu2 %v1960_v19, %s1694_s16  ;;  %1558 = vset.pattern.permute.xlu1 %v1696_v20 }
 0x1c7   :  { %v327_v28 = vpop.permute.xlu1 %326 }
 0x1c8   :  { %340 = vrot.lane.b32.xlu2 %v1896_v58, %s1694_s16  ;;  %v335_v5 = vmul.f32 %v1855_v25, %v327_v28  ;;  %v2038_v58 = vld [vmem:[%s2475_s7 + $0x48] sm:$0xff] }
 0x1c9   :  { %v2076_v39 = vmul.f32 %v2038_v58, %v1774_v4 }
 0x1ca   :  { %v355_v10 = vadd.f32 %v347_v7, %v335_v5 }
 0x1cf   :  { %v321_v17 = vpop.permute.xlu0 %320 }
 0x1d0   :  { %867 = vperm.xlu2 %1554, %v355_v10   ;;  %v332_v22 = vmul.f32 %v1862_v8, %v321_v17  ;;  %v364_v8 = vmul.f32 %v2031_v60, %v1774_v4 }
 0x1d7   :  { %v2062_v13 = vpop.permute.xlu0 %843 }
 0x1d8   :  { %1557 = vset.pattern.permute.xlu2 %v1695_v38 }
 0x1d9   :  { %831 = vperm.xlu2 %1557, %v1911_v50  }
 0x1e1   :  { %375 = vrot.lane.b32.xlu2 %v2031_v60, %s1693_s9 }
 0x1e9   :  { %371 = vrot.lane.b32.xlu2 %v2038_v58, %s1693_s9 }
 0x212   :  { %v325_v25 = vpop.permute.xlu2 %324 }
 0x213   :  { %v334_v50 = vmul.f32 %v1878_v2, %v325_v25 }
 0x216   :  { %v323_v19 = vpop.permute.xlu1 %322 }
 0x217   :  { %v333_v16 = vmul.f32 %v1887_v1, %v323_v19  ;;  %v2055_v1 = vld [vmem:[%s2475_s7 + $0x50] sm:$0xff] }
 0x21a   :  { %v345_v11 = vpop.permute.xlu2 %344 }
 0x21b   :  { %v354_v15 = vadd.f32 %v345_v11, %v334_v50 }
 0x21d   :  { %862 = vperm.xlu1 %1558, %v354_v15  }
 0x21e   :  { %v343_v18 = vpop.permute.xlu1 %342 }
 0x21f   :  { %v353_v23 = vadd.f32 %v343_v18, %v333_v16 }
 0x221   :  { %857 = vperm.xlu0 %1559, %v353_v23  }
 0x222   :  { %v341_v24 = vpop.permute.xlu2 %340 }
 0x223   :  { %v352_v51 = vadd.f32 %v341_v24, %v332_v22 }
 0x225   :  { %852 = vperm.xlu1 %1558, %v352_v51  }
 0x229   :  { %369 = vrot.lane.b32.xlu0 %v2048_v27, %s1693_s9 }
 0x22a   :  { %v868_v2 = vpop.permute.xlu2 %867 }
 0x22d   :  { %373 = vrot.lane.b32.xlu1 %v2055_v1, %s1693_s9 }
 0x22e   :  { %1560 = vset.pattern.permute.xlu1 %v1695_v38 }
 0x230   :  { %v827_v59 = vpop.f32.mrf.mxu2 }
 0x231   :  { %v849_v21 = vmul.f32 %v2062_v13, %v827_v59  ;;  %507 = vrot.lane.b32.xlu0 %v364_v8, %s1694_s16 }
 0x233   :  { %v2066_v29 = vadd.f32 %v868_v2, %v849_v21  ;;  %v2068_v14 = vpop.permute.xlu2 %831 }
 0x235   :  { %v877_v30 = vand.u32 2147483647, %v2066_v29  ;;  %v969_v28 = vmax.f32 %v2066_v29, 0.0  ;;  %vm957_vm10 = vcmp.ge.f32.partialorder %v2066_v29, 0.0 }
 0x237   :  { %v881_v31 = vsub.f32 0.0, %v877_v30 }
 0x239   :  { %v888_v32 = vmul.f32 1.442695, %v881_v31 }
 0x23b   :  { %1623 = vpow2.f32 %v888_v32  ;;  %v376_v33 = vpop.permute.xlu2 %375 }
 0x23c   :  { %v2071_v34 = vadd.f32 %v376_v33, %v364_v8 }
 0x23e   :  { %v388_v6 = vand.u32 2147483647, %v2071_v34  ;;  %vm468_vm13 = vcmp.ge.f32.partialorder %v2071_v34, 0.0 }
 0x240   :  { %v392_v36 = vsub.f32 0.0, %v388_v6 }
 0x241   :  { %v1624_v26 = vpop.eup %1623 }
 0x242   :  { %v399_v40 = vmul.f32 1.442695, %v392_v36  ;;  %v893_v9 = vadd.f32 1.0, %v1624_v26  ;;  %v1000_v44 = vmul.f32 -0.5, %v1624_v26  ;;  %v1003_v55 = vand.u32 2147483647, %v1624_v26 }
 0x243   :  { %v372_v41 = vpop.permute.xlu2 %371 }
 0x244   :  { %1625 = vpow2.f32 %v399_v40  ;;  %v2079_v43 = vadd.f32 %v372_v41, %v2076_v39  ;;  %v1001_v49 = vadd.f32 1.0, %v1000_v44  ;;  %vm1004_vm2 = vcmp.lt.f32.partialorder %v1003_v55, 0.0004427343 }
 0x245   :  { %1627 = vrcp.f32 %v893_v9  ;;  %v950_v19 = vand.u32 2147483648, %v893_v9  ;;  %v948_v50 = vand.u32 2147483647, %v893_v9  ;;  %vm944_vm4 = vweird.f32 %v893_v9 }
 0x246   :  { %v386_v45 = vand.u32 2147483647, %v2079_v43  ;;  %1629 = vlog2.f32 %v893_v9  ;;  %v1002_v62 = vmul.f32 %v1624_v26, %v1001_v49 }
 0x247   :  { %v951_v23 = vor.u32 1.1754944e-38, %v950_v19  ;;  %vm949_vm7 = vcmp.eq.f32.partialorder %v948_v50, 8.507059e+37 }
 0x248   :  { %v390_v46 = vsub.f32 0.0, %v386_v45 }
 0x24a   :  { %v1626_v52 = vpop.eup %1625  ;;  %v395_v0 = vmul.f32 1.442695, %v390_v46 }
 0x24b   :  { %v1628_v56 = vpop.eup %1627  ;;  %v404_v57 = vadd.f32 1.0, %v1626_v52 }
 0x24c   :  { %v1630_v35 = vpop.eup %1629  ;;  %1631 = vpow2.f32 %v395_v0  ;;  %v940_v37 = vmul.f32 %v1628_v56, %v893_v9  ;;  %vm945_vm3 = vweird.f32 %v1628_v56 }
 0x24d   :  { %1633 = vrcp.f32 %v404_v57  ;;  %v999_v12 = vmul.f32 0.6931472, %v1630_v35  ;;  %vm946_vm5 = vmor %vm944_vm4, %vm945_vm3  ;;  %vm455_vm6 = vweird.f32 %v404_v57  ;;  %v461_v24 = vand.u32 2147483648, %v404_v57  ;;  %v2092_v35 = vpop.permute.xlu1 %839 }
 0x24e   :  { %v941_v5 = vsub.f32 1.0, %v940_v37  ;;  %v459_v2 = vand.u32 2147483647, %v404_v57  ;;  %v2095_v37 = vpop.permute.xlu0 %835 }
 0x24f   :  { %v1005_v7 = vsel %vm1004_vm2, %v1002_v62, %v999_v12  ;;  %v462_v30 = vor.u32 1.1754944e-38, %v461_v24  ;;  %vm466_vm2 = vcmp.ge.f32.partialorder %v2079_v43, 0.0 }
 0x250   :  { %v1009_v10 = vadd.f32 %v1005_v7, %v969_v28  ;;  %v942_v25 = vmul.f32 %v1628_v56, %v941_v5  ;;  %vm460_vm12 = vcmp.eq.f32.partialorder %v459_v2, 8.507059e+37 }
 0x252   :  { %v1632_v11 = vpop.eup %1631  ;;  %1039 = vmatpush.msrb.mxu2 %v1009_v10  ;;  %v943_v15 = vadd.f32 %v1628_v56, %v942_v25 }
 0x253   :  { %v1634_v16 = vpop.eup %1633  ;;  %v402_v17 = vadd.f32 1.0, %v1632_v11 }
 0x254   :  { %v451_v18 = vmul.f32 %v1634_v16, %v404_v57  ;;  %v947_v22 = vsel %vm946_vm5, %v1628_v56, %v943_v15  ;;  %vm456_vm9 = vweird.f32 %v1634_v16 }
 0x255   :  { %1635 = vrcp.f32 %v402_v17  ;;  %v952_v8 = vsel %vm949_vm7, %v951_v23, %v947_v22  ;;  %vm457_vm11 = vmor %vm455_vm6, %vm456_vm9  ;;  %vm425_vm14 = vweird.f32 %v402_v17  ;;  %v431_v9 = vand.u32 2147483648, %v402_v17 }
 0x256   :  { %v452_v51 = vsub.f32 1.0, %v451_v18  ;;  %v961_v59 = vmul.f32 %v1624_v26, %v952_v8  ;;  %v429_v26 = vand.u32 2147483647, %v402_v17  ;;  %v2110_v18 = vmul.f32 %v2048_v27, %v1774_v4 }
 0x257   :  { %v432_v46 = vor.u32 1.1754944e-38, %v431_v9 }
 0x258   :  { %v453_v21 = vmul.f32 %v1634_v16, %v452_v51  ;;  %v2084_v31 = vsel %vm957_vm10, %v952_v8, %v961_v59  ;;  %vm430_vm1 = vcmp.eq.f32.partialorder %v429_v26, 8.507059e+37  ;;  %v2118_v8 = vmul.f32 %v2055_v1, %v1774_v4 }
 0x25a   :  { %v454_v32 = vadd.f32 %v1634_v16, %v453_v21 }
 0x25b   :  { %v1636_v33 = vpop.eup %1635 }
 0x25c   :  { %v458_v6 = vsel %vm457_vm11, %v1634_v16, %v454_v32  ;;  %v421_v36 = vmul.f32 %v1636_v33, %v402_v17  ;;  %vm426_vm15 = vweird.f32 %v1636_v33 }
 0x25d   :  { %v463_v40 = vsel %vm460_vm12, %v462_v30, %v458_v6  ;;  %vm427_vm0 = vmor %vm425_vm14, %vm426_vm15 }
 0x25e   :  { %v472_v41 = vmul.f32 %v1626_v52, %v463_v40  ;;  %v422_v44 = vsub.f32 1.0, %v421_v36  ;;  %v818_v52 = vpop.f32.mrf.mxu1 }
 0x25f   :  { %v846_v19 = vmul.f32 %v2068_v14, %v818_v52 }
 0x260   :  { %v476_v45 = vsel %vm468_vm13, %v463_v40, %v472_v41  ;;  %v423_v29 = vmul.f32 %v1636_v33, %v422_v44 }
 0x261   :  { %487 = vrot.lane.b32.xlu1 %v476_v45, %s1693_s9 }
 0x262   :  { %v424_v49 = vadd.f32 %v1636_v33, %v423_v29 }
 0x264   :  { %v428_v0 = vsel %vm427_vm0, %v1636_v33, %v424_v49 }
 0x265   :  { %v433_v55 = vsel %vm430_vm1, %v432_v46, %v428_v0 }
 0x266   :  { %v470_v34 = vmul.f32 %v1632_v11, %v433_v55  ;;  %v821_v57 = vpop.f32.mrf.mxu1 }
 0x267   :  { %v847_v5 = vmul.f32 %v2095_v37, %v821_v57 }
 0x268   :  { %v474_v56 = vsel %vm466_vm2, %v433_v55, %v470_v34 }
 0x269   :  { %483 = vrot.lane.b32.xlu1 %v474_v56, %s1693_s9 }
 0x26e   :  { %v824_v12 = vpop.f32.mrf.mxu1 }
 0x26f   :  { %v848_v43 = vmul.f32 %v2092_v35, %v824_v12 }
 0x271   :  { %503 = vrot.lane.b32.xlu1 %v2076_v39, %s1694_s16 }
 0x279   :  { %1069 = vperm.xlu1 %1560, %v476_v45  }
 0x281   :  { %1061 = vperm.xlu1 %1560, %v474_v56  }
 0x289   :  { %1563 = vset.pattern.permute.xlu1 %v1696_v20 }
 0x28f   :  { %v863_v62 = vpop.permute.xlu1 %862 }
 0x290   :  { %v2098_v28 = vadd.f32 %v863_v62, %v848_v43 }
 0x292   :  { %v876_v39 = vand.u32 2147483647, %v2098_v28  ;;  %v968_v34 = vmax.f32 %v2098_v28, 0.0  ;;  %vm956_vm11 = vcmp.ge.f32.partialorder %v2098_v28, 0.0  ;;  %v1515_v28 = vld [vmem:[%s2479_s3 + $0x28] sm:$0xff] }
 0x293   :  { %v858_v7 = vpop.permute.xlu0 %857 }
 0x294   :  { %v880_v10 = vsub.f32 0.0, %v876_v39  ;;  %v2102_v25 = vadd.f32 %v858_v7, %v847_v5 }
 0x296   :  { %v886_v50 = vmul.f32 1.442695, %v880_v10  ;;  %v875_v11 = vand.u32 2147483647, %v2102_v25  ;;  %v967_v56 = vmax.f32 %v2102_v25, 0.0  ;;  %vm955_vm14 = vcmp.ge.f32.partialorder %v2102_v25, 0.0 }
 0x297   :  { %v853_v15 = vpop.permute.xlu1 %852 }
 0x298   :  { %1637 = vpow2.f32 %v886_v50  ;;  %v879_v16 = vsub.f32 0.0, %v875_v11  ;;  %v2106_v17 = vadd.f32 %v853_v15, %v846_v19 }
 0x29a   :  { %v884_v22 = vmul.f32 1.442695, %v879_v16  ;;  %v874_v23 = vand.u32 2147483647, %v2106_v17  ;;  %v966_v62 = vmax.f32 %v2106_v17, 0.0 }
 0x29b   :  { %v370_v24 = vpop.permute.xlu0 %369 }
 0x29c   :  { %1639 = vpow2.f32 %v884_v22  ;;  %v878_v51 = vsub.f32 0.0, %v874_v23  ;;  %v2114_v2 = vadd.f32 %v370_v24, %v2110_v18 }
 0x29e   :  { %v2120_v59 = vpop.eup %1637  ;;  %v882_v21 = vmul.f32 1.442695, %v878_v51  ;;  %v385_v30 = vand.u32 2147483647, %v2114_v2 }
 0x29f   :  { %v374_v32 = vpop.permute.xlu1 %373  ;;  %v2124_v33 = vadd.f32 1.0, %v2120_v59  ;;  %v991_v6 = vmul.f32 -0.5, %v2120_v59  ;;  %v994_v45 = vand.u32 2147483647, %v2120_v59 }
 0x2a0   :  { %1641 = vpow2.f32 %v882_v21  ;;  %v389_v36 = vsub.f32 0.0, %v385_v30  ;;  %v2128_v40 = vadd.f32 %v374_v32, %v2118_v8 }
 0x2a1   :  { %1643 = vrcp.f32 %v2124_v33  ;;  %v992_v26 = vadd.f32 1.0, %v991_v6  ;;  %vm2149_vm3 = vcmp.lt.f32.partialorder %v994_v45, 0.0004427343  ;;  %v933_v11 = vand.u32 2147483647, %v2124_v33 }
 0x2a2   :  { %v2131_v9 = vpop.eup %1639  ;;  %v393_v41 = vmul.f32 1.442695, %v389_v36  ;;  %v387_v44 = vand.u32 2147483647, %v2128_v40  ;;  %1645 = vlog2.f32 %v2124_v33  ;;  %v935_v23 = vand.u32 2147483648, %v2124_v33 }
 0x2a3   :  { %v2137_v29 = vadd.f32 1.0, %v2131_v9  ;;  %v982_v49 = vmul.f32 -0.5, %v2131_v9  ;;  %v993_v57 = vmul.f32 %v2120_v59, %v992_v26  ;;  %v985_v39 = vand.u32 2147483647, %v2131_v9 }
 0x2a4   :  { %1647 = vpow2.f32 %v393_v41  ;;  %v391_v46 = vsub.f32 0.0, %v387_v44  ;;  %vm929_vm4 = vweird.f32 %v2124_v33 }
 0x2a5   :  { %1649 = vrcp.f32 %v2137_v29  ;;  %v983_v50 = vadd.f32 1.0, %v982_v49  ;;  %v918_v16 = vand.u32 2147483647, %v2137_v29  ;;  %v920_v22 = vand.u32 2147483648, %v2137_v29 }
 0x2a6   :  { %v2141_v0 = vpop.eup %1641  ;;  %v397_v55 = vmul.f32 1.442695, %v391_v46  ;;  %1651 = vlog2.f32 %v2137_v29  ;;  %vm2178_vm5 = vcmp.lt.f32.partialorder %v985_v39, 0.0004427343  ;;  %vm914_vm6 = vweird.f32 %v2137_v29 }
 0x2a7   :  { %v2146_v52 = vpop.eup %1643  ;;  %v2154_v43 = vadd.f32 1.0, %v2141_v0  ;;  %v973_v7 = vmul.f32 -0.5, %v2141_v0  ;;  %v976_v30 = vand.u32 2147483647, %v2141_v0  ;;  %v984_v46 = vmul.f32 %v2131_v9, %v983_v50 }
 0x2a8   :  { %v1646_v5 = vpop.eup %1645  ;;  %1653 = vpow2.f32 %v397_v55  ;;  %v925_v10 = vmul.f32 %v2146_v52, %v2124_v33  ;;  %vm2203_vm9 = vcmp.eq.f32.partialorder %v918_v16, 8.507059e+37  ;;  %v921_v50 = vor.u32 1.1754944e-38, %v920_v22 }
 0x2a9   :  { %v990_v19 = vmul.f32 0.6931472, %v1646_v5  ;;  %1655 = vrcp.f32 %v2154_v43  ;;  %v974_v44 = vadd.f32 1.0, %v973_v7  ;;  %v903_v49 = vand.u32 2147483647, %v2154_v43 }
 0x2aa   :  { %v2163_v15 = vpop.eup %1647  ;;  %1657 = vlog2.f32 %v2154_v43  ;;  %v926_v32 = vsub.f32 1.0, %v925_v10  ;;  %vm2199_vm7 = vcmp.lt.f32.partialorder %v976_v30, 0.0004427343  ;;  %vm899_vm10 = vweird.f32 %v2154_v43 }
 0x2ab   :  { %v2169_v24 = vpop.eup %1649  ;;  %v2172_v51 = vadd.f32 1.0, %v2163_v15  ;;  %v996_v21 = vsel %vm2149_vm3, %v993_v57, %v990_v19  ;;  %vm2213_vm12 = vcmp.eq.f32.partialorder %v903_v49, 8.507059e+37  ;;  %vm930_vm13 = vweird.f32 %v2146_v52 }
 0x2ac   :  { %v1652_v6 = vpop.eup %1651  ;;  %v1008_v36 = vadd.f32 %v996_v21, %v968_v34  ;;  %v910_v26 = vmul.f32 %v2169_v24, %v2137_v29  ;;  %v905_v34 = vand.u32 2147483648, %v2154_v43  ;;  %v927_v12 = vmul.f32 %v2146_v52, %v926_v32  ;;  %vm931_vm2 = vmor %vm929_vm4, %vm930_vm13 }
 0x2ad   :  { %1659 = vrcp.f32 %v2172_v51  ;;  %v981_v45 = vmul.f32 0.6931472, %v1652_v6  ;;  %v975_v32 = vmul.f32 %v2141_v0, %v974_v44  ;;  %vm410_vm15 = vweird.f32 %v2172_v51 }
 0x2ae   :  { %v2187_v55 = vpop.eup %1653  ;;  %1040 = vmatpush.msrb.mxu2 %v1008_v36  ;;  %v911_v57 = vsub.f32 1.0, %v910_v26  ;;  %v906_v22 = vor.u32 1.1754944e-38, %v905_v34  ;;  %v928_v44 = vadd.f32 %v2146_v52, %v927_v12  ;;  %vm915_vm0 = vweird.f32 %v2169_v24  ;;  %v1514_v34 = vld [vmem:[%s2479_s3 + $0x20] sm:$0xff] }
 0x2af   :  { %v2192_v5 = vpop.eup %1655  ;;  %v2195_v39 = vadd.f32 1.0, %v2187_v55  ;;  %v987_v7 = vsel %vm2178_vm5, %v984_v46, %v981_v45  ;;  %v414_v46 = vand.u32 2147483647, %v2172_v51  ;;  %v936_v12 = vor.u32 1.1754944e-38, %v935_v23  ;;  %vm916_vm4 = vmor %vm914_vm6, %vm915_vm0 }
 0x2b0   :  { %v1658_v21 = vpop.eup %1657  ;;  %v1007_v6 = vadd.f32 %v987_v7, %v967_v56  ;;  %v895_v36 = vmul.f32 %v2192_v5, %v2154_v43  ;;  %v912_v41 = vmul.f32 %v2169_v24, %v911_v57  ;;  %vm900_vm1 = vweird.f32 %v2192_v5 }
 0x2b1   :  { %1661 = vrcp.f32 %v2195_v39  ;;  %v972_v30 = vmul.f32 0.6931472, %v1658_v21  ;;  %vm934_vm3 = vcmp.eq.f32.partialorder %v933_v11, 8.507059e+37  ;;  %vm440_vm5 = vweird.f32 %v2195_v39  ;;  %vm901_vm6 = vmor %vm899_vm10, %vm900_vm1 }
 0x2b2   :  { %1041 = vmatpush.msrb.mxu2 %v1007_v6  ;;  %v896_v56 = vsub.f32 1.0, %v895_v36  ;;  %v913_v10 = vadd.f32 %v2169_v24, %v912_v41  ;;  %v416_v6 = vand.u32 2147483648, %v2172_v51  ;;  %v446_v41 = vand.u32 2147483648, %v2195_v39 }
 0x2b3   :  { %v1660_v26 = vpop.eup %1659  ;;  %v978_v45 = vsel %vm2199_vm7, %v975_v32, %v972_v30  ;;  %vm467_vm0 = vcmp.ge.f32.partialorder %v2128_v40, 0.0  ;;  %v1517_v40 = vld [vmem:[%s2479_s3 + $0x38] sm:$0xff] }
 0x2b4   :  { %v1006_v49 = vadd.f32 %v978_v45, %v966_v62  ;;  %v406_v57 = vmul.f32 %v1660_v26, %v2172_v51  ;;  %v897_v7 = vmul.f32 %v2192_v5, %v896_v56  ;;  %v932_v62 = vsel %vm931_vm2, %v2146_v52, %v928_v44 }
 0x2b5   :  { %v937_v23 = vsel %vm934_vm3, %v936_v12, %v932_v62  ;;  %v444_v52 = vand.u32 2147483647, %v2195_v39  ;;  %v917_v11 = vsel %vm916_vm4, %v2169_v24, %v913_v10  ;;  %vm411_vm7 = vweird.f32 %v1660_v26  ;;  %v508_v12 = vpop.permute.xlu0 %507 }
 0x2b6   :  { %1042 = vmatpush.msrb.mxu2 %v1006_v49  ;;  %v407_v21 = vsub.f32 1.0, %v406_v57  ;;  %v898_v33 = vadd.f32 %v2192_v5, %v897_v7  ;;  %v960_v36 = vmul.f32 %v2120_v59, %v937_v23  ;;  %v922_v29 = vsel %vm2203_vm9, %v921_v50, %v917_v11  ;;  %vm412_vm10 = vmor %vm410_vm15, %vm411_vm7 }
 0x2b7   :  { %v1662_v32 = vpop.eup %1661  ;;  %1518 = vmatmul.msk.f32.vlgmr.msrb.gmra.mxu2 %vm788_vm8, %v1514_v34  ;;  %v959_v24 = vmul.f32 %v2131_v9, %v922_v29  ;;  %v417_v19 = vor.u32 1.1754944e-38, %v416_v6  ;;  %vm415_vm9 = vcmp.eq.f32.partialorder %v414_v46, 8.507059e+37  ;;  %v447_v51 = vor.u32 1.1754944e-38, %v446_v41 }
 0x2b8   :  { %v408_v30 = vmul.f32 %v1660_v26, %v407_v21  ;;  %v436_v56 = vmul.f32 %v1662_v32, %v2195_v39  ;;  %v902_v44 = vsel %vm901_vm6, %v2192_v5, %v898_v33  ;;  %v2265_v59 = vsel %vm956_vm11, %v937_v23, %v960_v36 }
 0x2b9   :  { %vm441_vm13 = vweird.f32 %v1662_v32  ;;  %v907_v43 = vsel %vm2213_vm12, %v906_v22, %v902_v44  ;;  %v2274_v5 = vsel %vm955_vm14, %v922_v29, %v959_v24  ;;  %vm954_vm11 = vcmp.ge.f32.partialorder %v2106_v17, 0.0 }
 0x2ba   :  { %v409_v45 = vadd.f32 %v1660_v26, %v408_v30  ;;  %v437_v49 = vsub.f32 1.0, %v436_v56  ;;  %v958_v50 = vmul.f32 %v2141_v0, %v907_v43  ;;  %vm442_vm12 = vmor %vm440_vm5, %vm441_vm13  ;;  %vm445_vm14 = vcmp.eq.f32.partialorder %v444_v52, 8.507059e+37 }
 0x2bb   :  { %vm465_vm15 = vcmp.ge.f32.partialorder %v2114_v2, 0.0  ;;  %v2297_v2 = vld [vmem:[%s2475_s7 + $0x60] sm:$0xf] }
 0x2bc   :  { %v413_v9 = vsel %vm412_vm10, %v1660_v26, %v409_v45  ;;  %v438_v34 = vmul.f32 %v1662_v32, %v437_v49  ;;  %v2282_v22 = vsel %vm954_vm11, %v907_v43, %v958_v50 }
 0x2bd   :  { %v418_v16 = vsel %vm415_vm9, %v417_v19, %v413_v9 }
 0x2be   :  { %v469_v25 = vmul.f32 %v2163_v15, %v418_v16  ;;  %v439_v0 = vadd.f32 %v1662_v32, %v438_v34  ;;  %v1516_v15 = vld [vmem:[%s2479_s3 + $0x30] sm:$0xff] }
 0x2bf   :  { %1519 = vmatmul.msk.f32.gmra.mxu2 %vm788_vm8, %v1515_v28 }
 0x2c0   :  { %v473_v26 = vsel %vm465_vm15, %v418_v16, %v469_v25  ;;  %v443_v46 = vsel %vm442_vm12, %v1662_v32, %v439_v0 }
 0x2c1   :  { %481 = vrot.lane.b32.xlu0 %v473_v26, %s1693_s9  ;;  %v448_v17 = vsel %vm445_vm14, %v447_v51, %v443_v46 }
 0x2c2   :  { %v471_v39 = vmul.f32 %v2187_v55, %v448_v17 }
 0x2c4   :  { %v475_v57 = vsel %vm467_vm0, %v448_v17, %v471_v39 }
 0x2c5   :  { %485 = vrot.lane.b32.xlu2 %v475_v57, %s1693_s9 }
 0x2c7   :  { %1520 = vmatmul.msk.f32.gmra.mxu2 %vm788_vm8, %v1516_v15 }
 0x2c9   :  { %521 = vrot.lane.b32.xlu0 %v2297_v2, %s1693_s9 }
 0x2cd   :  { %505 = vrot.lane.b32.xlu2 %v2118_v8, %s1694_s16 }
 0x2cf   :  { %1521 = vmatmul.msk.f32.gmra.mxu2 %vm788_vm8, %v1517_v40 }
 0x2d3   :  { %v488_v55 = vpop.permute.xlu1 %487 }
 0x2d4   :  { %v496_v7 = vmul.f32 %v2031_v60, %v488_v55  ;;  %v519_v60 = vmul.f32 %v2297_v2, %v1774_v4 }
 0x2d5   :  { %501 = vrot.lane.b32.xlu2 %v2110_v18, %s1694_s16 }
 0x2d6   :  { %v516_v10 = vadd.f32 %v508_v12, %v496_v7 }
 0x2d8   :  { %1093 = vperm.xlu0 %1559, %v516_v10  }
 0x2db   :  { %v484_v62 = vpop.permute.xlu1 %483 }
 0x2dc   :  { %v494_v21 = vmul.f32 %v2038_v58, %v484_v62 }
 0x2dd   :  { %1065 = vperm.xlu2 %1557, %v475_v57  }
 0x2e0   :  { %1561 = vset.pattern.permute.xlu0 %v1695_v38 }
 0x2e1   :  { %1057 = vperm.xlu0 %1561, %v473_v26  }
 0x2e3   :  { %v504_v6 = vpop.permute.xlu1 %503 }
 0x2e4   :  { %v514_v8 = vadd.f32 %v504_v6, %v494_v21 }
 0x2e5   :  { %1562 = vset.pattern.permute.xlu2 %v1696_v20 }
 0x2e6   :  { %1083 = vperm.xlu1 %1563, %v514_v8  }
 0x2e9   :  { %1566 = vset.pattern.permute.xlu0 %v1696_v20 }
 0x2ea   :  { %554 = vrot.lane.b32.xlu0 %v519_v60, %s1694_s16 }
 0x2eb   :  { %v2323_v24 = vpop.permute.xlu1 %1069 }
 0x2ee   :  { %1564 = vset.pattern.permute.xlu1 %v1695_v38 }
 0x31f   :  { %v486_v18 = vpop.permute.xlu2 %485 }
 0x320   :  { %v495_v58 = vmul.f32 %v2055_v1, %v486_v18 }
 0x327   :  { %v506_v23 = vpop.permute.xlu2 %505 }
 0x328   :  { %v515_v32 = vadd.f32 %v506_v23, %v495_v58 }
 0x32a   :  { %1088 = vperm.xlu2 %1562, %v515_v32  }
 0x32f   :  { %v502_v11 = vpop.permute.xlu2 %501 }
 0x333   :  { %v482_v52 = vpop.permute.xlu0 %481 }
 0x334   :  { %v493_v33 = vmul.f32 %v2048_v27, %v482_v52  ;;  %v2327_v27 = vpop.permute.xlu1 %1061 }
 0x336   :  { %v513_v36 = vadd.f32 %v502_v11, %v493_v33 }
 0x338   :  { %1078 = vperm.xlu2 %1562, %v513_v36  }
 0x33a   :  { %v2321_v30 = vpop.f32.mrf.mxu2 }
 0x33b   :  { %v522_v38 = vpop.permute.xlu0 %521 }
 0x33c   :  { %v524_v56 = vadd.f32 %v522_v38, %v519_v60 }
 0x33e   :  { %v525_v29 = vand.u32 2147483647, %v524_v56  ;;  %vm545_vm4 = vcmp.ge.f32.partialorder %v524_v56, 0.0 }
 0x340   :  { %v526_v4 = vsub.f32 0.0, %v525_v29 }
 0x342   :  { %v527_v41 = vmul.f32 1.442695, %v526_v4  ;;  %v1047_v44 = vpop.f32.mrf.mxu2 }
 0x343   :  { %v1073_v51 = vmul.f32 %v2327_v27, %v1047_v44 }
 0x344   :  { %1663 = vpow2.f32 %v527_v41 }
 0x34a   :  { %v1664_v1 = vpop.eup %1663  ;;  %v2325_v45 = vpop.f32.mrf.mxu2 }
 0x34b   :  { %v529_v49 = vadd.f32 1.0, %v1664_v1  ;;  %v1094_v28 = vpop.permute.xlu0 %1093 }
 0x34d   :  { %1665 = vrcp.f32 %v529_v49  ;;  %v541_v0 = vand.u32 2147483648, %v529_v49  ;;  %v539_v17 = vand.u32 2147483647, %v529_v49  ;;  %vm535_vm2 = vweird.f32 %v529_v49 }
 0x34f   :  { %v542_v12 = vor.u32 1.1754944e-38, %v541_v0  ;;  %vm540_vm5 = vcmp.eq.f32.partialorder %v539_v17, 8.507059e+37 }
 0x352   :  { %v1053_v43 = vpop.f32.mrf.mxu2 }
 0x353   :  { %v1666_v19 = vpop.eup %1665  ;;  %v1075_v50 = vmul.f32 %v2323_v24, %v1053_v43 }
 0x354   :  { %v531_v9 = vmul.f32 %v1666_v19, %v529_v49  ;;  %vm536_vm1 = vweird.f32 %v1666_v19 }
 0x355   :  { %v2330_v34 = vadd.f32 %v1094_v28, %v1075_v50  ;;  %vm537_vm3 = vmor %vm535_vm2, %vm536_vm1 }
 0x356   :  { %v532_v16 = vsub.f32 1.0, %v531_v9 }
 0x357   :  { %v1103_v25 = vand.u32 2147483647, %v2330_v34  ;;  %v1195_v4 = vmax.f32 %v2330_v34, 0.0  ;;  %vm1183_vm15 = vcmp.ge.f32.partialorder %v2330_v34, 0.0 }
 0x358   :  { %v1084_v26 = vpop.permute.xlu1 %1083  ;;  %v533_v46 = vmul.f32 %v1666_v19, %v532_v16 }
 0x359   :  { %v1107_v39 = vsub.f32 0.0, %v1103_v25  ;;  %v2334_v57 = vadd.f32 %v1084_v26, %v1073_v51 }
 0x35a   :  { %v534_v15 = vadd.f32 %v1666_v19, %v533_v46 }
 0x35b   :  { %v1114_v40 = vmul.f32 1.442695, %v1107_v39  ;;  %v1101_v55 = vand.u32 2147483647, %v2334_v57  ;;  %vm1181_vm1 = vcmp.ge.f32.partialorder %v2334_v57, 0.0 }
 0x35c   :  { %v538_v7 = vsel %vm537_vm3, %v1666_v19, %v534_v15 }
 0x35d   :  { %1667 = vpow2.f32 %v1114_v40  ;;  %v1105_v10 = vsub.f32 0.0, %v1101_v55  ;;  %v543_v62 = vsel %vm540_vm5, %v542_v12, %v538_v7 }
 0x35e   :  { %v546_v21 = vmul.f32 %v1664_v1, %v543_v62 }
 0x35f   :  { %v1110_v6 = vmul.f32 1.442695, %v1105_v10  ;;  %v2347_v10 = vpop.permute.xlu2 %1065 }
 0x360   :  { %v547_v8 = vsel %vm545_vm4, %v543_v62, %v546_v21  ;;  %v1074_v21 = vmul.f32 %v2347_v10, %v2325_v45 }
 0x361   :  { %1669 = vpow2.f32 %v1110_v6  ;;  %549 = vrot.lane.b32.xlu2 %v547_v8, %s1693_s9  ;;  %1261 = vperm.xlu1 %1564, %v547_v8  }
 0x363   :  { %v1668_v60 = vpop.eup %1667 }
 0x364   :  { %v1119_v18 = vadd.f32 1.0, %v1668_v60  ;;  %v1226_v58 = vmul.f32 -0.5, %v1668_v60  ;;  %v1229_v33 = vand.u32 2147483647, %v1668_v60 }
 0x366   :  { %1671 = vrcp.f32 %v1119_v18  ;;  %v1227_v52 = vadd.f32 1.0, %v1226_v58  ;;  %vm1230_vm7 = vcmp.lt.f32.partialorder %v1229_v33, 0.0004427343  ;;  %v1174_v49 = vand.u32 2147483647, %v1119_v18  ;;  %v2357_v58 = vpop.permute.xlu0 %1057 }
 0x367   :  { %v2338_v23 = vpop.eup %1669  ;;  %1673 = vlog2.f32 %v1119_v18  ;;  %v1176_v43 = vand.u32 2147483648, %v1119_v18  ;;  %vm1170_vm13 = vweird.f32 %v1119_v18 }
 0x368   :  { %v1117_v32 = vadd.f32 1.0, %v2338_v23  ;;  %v1228_v29 = vmul.f32 %v1668_v60, %v1227_v52  ;;  %vm1175_vm9 = vcmp.eq.f32.partialorder %v1174_v49, 8.507059e+37  ;;  %v1072_v52 = vmul.f32 %v2357_v58, %v2321_v30 }
 0x369   :  { %1565 = vset.pattern.permute.xlu1 %v1696_v20  ;;  %v1177_v51 = vor.u32 1.1754944e-38, %v1176_v43  ;;  %v1211_v43 = vand.u32 2147483647, %v2338_v23 }
 0x36a   :  { %1675 = vrcp.f32 %v1117_v32  ;;  %v1146_v16 = vand.u32 2147483648, %v1117_v32  ;;  %v1144_v0 = vand.u32 2147483647, %v1117_v32  ;;  %vm1140_vm12 = vweird.f32 %v1117_v32 }
 0x36b   :  { %vm1212_vm3 = vcmp.lt.f32.partialorder %v1211_v43, 0.0004427343 }
 0x36c   :  { %v1672_v11 = vpop.eup %1671  ;;  %v1147_v15 = vor.u32 1.1754944e-38, %v1146_v16  ;;  %vm1145_vm0 = vcmp.eq.f32.partialorder %v1144_v0, 8.507059e+37 }
 0x36d   :  { %v1674_v36 = vpop.eup %1673  ;;  %v1166_v38 = vmul.f32 %v1672_v11, %v1119_v18  ;;  %vm1171_vm6 = vweird.f32 %v1672_v11 }
 0x36e   :  { %v1225_v56 = vmul.f32 0.6931472, %v1674_v36  ;;  %vm1172_vm10 = vmor %vm1170_vm13, %vm1171_vm6 }
 0x36f   :  { %v1167_v41 = vsub.f32 1.0, %v1166_v38 }
 0x370   :  { %v1676_v44 = vpop.eup %1675  ;;  %v1231_v1 = vsel %vm1230_vm7, %v1228_v29, %v1225_v56  ;;  %v1208_v29 = vmul.f32 -0.5, %v2338_v23 }
 0x371   :  { %v1235_v19 = vadd.f32 %v1231_v1, %v1195_v4  ;;  %v1136_v50 = vmul.f32 %v1676_v44, %v1117_v32  ;;  %v1168_v28 = vmul.f32 %v1672_v11, %v1167_v41  ;;  %vm1141_vm11 = vweird.f32 %v1676_v44 }
 0x372   :  { %vm1142_vm14 = vmor %vm1140_vm12, %vm1141_vm11  ;;  %v1209_v49 = vadd.f32 1.0, %v1208_v29 }
 0x373   :  { %1252 = vmatpush.msrb.mxu3 %v1235_v19  ;;  %v1137_v20 = vsub.f32 1.0, %v1136_v50  ;;  %v1169_v9 = vadd.f32 %v1672_v11, %v1168_v28 }
 0x374   :  { %v1210_v16 = vmul.f32 %v2338_v23, %v1209_v49 }
 0x375   :  { %v1138_v25 = vmul.f32 %v1676_v44, %v1137_v20  ;;  %v1173_v26 = vsel %vm1172_vm10, %v1672_v11, %v1169_v9 }
 0x376   :  { %v1178_v46 = vsel %vm1175_vm9, %v1177_v51, %v1173_v26  ;;  %v1193_v26 = vmax.f32 %v2334_v57, 0.0 }
 0x377   :  { %v1139_v17 = vadd.f32 %v1676_v44, %v1138_v25  ;;  %v1187_v39 = vmul.f32 %v1668_v60, %v1178_v46 }
 0x379   :  { %v1143_v40 = vsel %vm1142_vm14, %v1676_v44, %v1139_v17  ;;  %v2344_v55 = vsel %vm1183_vm15, %v1178_v46, %v1187_v39 }
 0x37a   :  { %v1148_v12 = vsel %vm1145_vm0, %v1147_v15, %v1143_v40  ;;  %vm1291_vm0 = vcmask 1043456  }
 0x37b   :  { %v1185_v7 = vmul.f32 %v2338_v23, %v1148_v12 }
 0x37d   :  { %v2350_v62 = vsel %vm1181_vm1, %v1148_v12, %v1185_v7  ;;  %vm1278_vm1 = vcmask 31744  }
 0x384   :  { %v1089_v6 = vpop.permute.xlu2 %1088 }
 0x385   :  { %v2354_v8 = vadd.f32 %v1089_v6, %v1074_v21 }
 0x387   :  { %v1102_v34 = vand.u32 2147483647, %v2354_v8  ;;  %v1194_v51 = vmax.f32 %v2354_v8, 0.0  ;;  %vm1182_vm13 = vcmp.ge.f32.partialorder %v2354_v8, 0.0 }
 0x389   :  { %v1106_v60 = vsub.f32 0.0, %v1102_v34 }
 0x38b   :  { %v1112_v18 = vmul.f32 1.442695, %v1106_v60 }
 0x38d   :  { %1677 = vpow2.f32 %v1112_v18 }
 0x38e   :  { %1679 = vlog2.f32 %v1117_v32 }
 0x392   :  { %v1079_v33 = vpop.permute.xlu2 %1078 }
 0x393   :  { %v1678_v11 = vpop.eup %1677  ;;  %v2361_v36 = vadd.f32 %v1079_v33, %v1072_v52 }
 0x394   :  { %v1118_v38 = vadd.f32 1.0, %v1678_v11  ;;  %v1217_v56 = vmul.f32 -0.5, %v1678_v11  ;;  %v1680_v41 = vpop.eup %1679  ;;  %v1220_v30 = vand.u32 2147483647, %v1678_v11 }
 0x395   :  { %v1100_v45 = vand.u32 2147483647, %v2361_v36  ;;  %v1207_v50 = vmul.f32 0.6931472, %v1680_v41  ;;  %vm1180_vm15 = vcmp.ge.f32.partialorder %v2361_v36, 0.0 }
 0x396   :  { %1681 = vrcp.f32 %v1118_v38  ;;  %v1218_v1 = vadd.f32 1.0, %v1217_v56  ;;  %vm1221_vm2 = vcmp.lt.f32.partialorder %v1220_v30, 0.0004427343  ;;  %v1161_v17 = vand.u32 2147483648, %v1118_v38 }
 0x397   :  { %v1104_v4 = vsub.f32 0.0, %v1100_v45  ;;  %1683 = vlog2.f32 %v1118_v38  ;;  %v1213_v46 = vsel %vm1212_vm3, %v1210_v16, %v1207_v50  ;;  %v1159_v12 = vand.u32 2147483647, %v1118_v38 }
 0x398   :  { %v1219_v9 = vmul.f32 %v1678_v11, %v1218_v1  ;;  %v1233_v21 = vadd.f32 %v1213_v46, %v1193_v26  ;;  %vm1155_vm4 = vweird.f32 %v1118_v38  ;;  %v1162_v34 = vor.u32 1.1754944e-38, %v1161_v17  ;;  %v2380_v46 = vld [vmem:[%s2477_s1 + $0x8] sm:$0xf]  ;;  %v2385_v17 = vld [vmem:[%s2477_s1 + $0xc] sm:$0xf] }
 0x399   :  { %v1108_v44 = vmul.f32 1.442695, %v1104_v4  ;;  %vm1160_vm6 = vcmp.eq.f32.partialorder %v1159_v12, 8.507059e+37  ;;  %v1275_v12 = vld [vmem:[%s2481_s6 + $0x10] sm:$0xff] }
 0x39b   :  { %1685 = vpow2.f32 %v1108_v44  ;;  %v1192_v44 = vmax.f32 %v2361_v36, 0.0  ;;  %v1272_v36 = vmul.f32 %v2385_v17, %v2380_v46 }
 0x39c   :  { %v1682_v19 = vpop.eup %1681 }
 0x39d   :  { %v1684_v32 = vpop.eup %1683  ;;  %v1151_v28 = vmul.f32 %v1682_v19, %v1118_v38  ;;  %vm1156_vm5 = vweird.f32 %v1682_v19 }
 0x39e   :  { %v1216_v20 = vmul.f32 0.6931472, %v1684_v32  ;;  %vm1157_vm7 = vmor %vm1155_vm4, %vm1156_vm5 }
 0x39f   :  { %v1152_v25 = vsub.f32 1.0, %v1151_v28 }
 0x3a0   :  { %v1222_v0 = vsel %vm1221_vm2, %v1219_v9, %v1216_v20  ;;  %vm1490_vm2 = vcmask 1044480  }
 0x3a1   :  { %v1686_v39 = vpop.eup %1685  ;;  %v1234_v15 = vadd.f32 %v1222_v0, %v1194_v51  ;;  %v1153_v40 = vmul.f32 %v1682_v19, %v1152_v25  ;;  %v555_v25 = vpop.permute.xlu0 %554 }
 0x3a2   :  { %v1116_v7 = vadd.f32 1.0, %v1686_v39  ;;  %v1199_v23 = vmul.f32 -0.5, %v1686_v39  ;;  %v1202_v33 = vand.u32 2147483647, %v1686_v39 }
 0x3a3   :  { %1253 = vmatpush.msrb.mxu3 %v1234_v15  ;;  %v1154_v6 = vadd.f32 %v1682_v19, %v1153_v40  ;;  %v1273_v15 = vld [vmem:[%s2481_s6] sm:$0xff]  ;;  %v1274_v40 = vld [vmem:[%s2481_s6 + $0x8] sm:$0xff] }
 0x3a4   :  { %1687 = vrcp.f32 %v1116_v7  ;;  %v1200_v52 = vadd.f32 1.0, %v1199_v23  ;;  %vm1203_vm10 = vcmp.lt.f32.partialorder %v1202_v33, 0.0004427343  ;;  %v1131_v30 = vand.u32 2147483648, %v1116_v7 }
 0x3a5   :  { %1254 = vmatpush.msrb.mxu3 %v1233_v21  ;;  %1689 = vlog2.f32 %v1116_v7  ;;  %v1158_v60 = vsel %vm1157_vm7, %v1682_v19, %v1154_v6  ;;  %v1129_v8 = vand.u32 2147483647, %v1116_v7  ;;  %vm1125_vm11 = vweird.f32 %v1116_v7 }
 0x3a6   :  { %v1163_v57 = vsel %vm1160_vm6, %v1162_v34, %v1158_v60  ;;  %v1201_v38 = vmul.f32 %v1686_v39, %v1200_v52  ;;  %v1132_v32 = vor.u32 1.1754944e-38, %v1131_v30 }
 0x3a7   :  { %v1186_v18 = vmul.f32 %v1678_v11, %v1163_v57  ;;  %v1236_v11 = vld [vmem:[%s2480_s5] sm:$0xf]  ;;  %vm1130_vm14 = vcmp.eq.f32.partialorder %v1129_v8, 8.507059e+37 }
 0x3a9   :  { %v1190_v45 = vsel %vm1182_vm13, %v1163_v57, %v1186_v18 }
 0x3aa   :  { %v1688_v56 = vpop.eup %1687 }
 0x3ab   :  { %v1690_v29 = vpop.eup %1689  ;;  %v1121_v4 = vmul.f32 %v1688_v56, %v1116_v7  ;;  %vm1126_vm9 = vweird.f32 %v1688_v56  ;;  %v1276_v7 = vld [vmem:[%s2481_s6 + $0x18] sm:$0xff] }
 0x3ac   :  { %v1198_v41 = vmul.f32 0.6931472, %v1690_v29  ;;  %vm1127_vm12 = vmor %vm1125_vm11, %vm1126_vm9 }
 0x3ad   :  { %v1122_v1 = vsub.f32 1.0, %v1121_v4 }
 0x3ae   :  { %v1204_v49 = vsel %vm1203_vm10, %v1201_v38, %v1198_v41 }
 0x3af   :  { %v1232_v43 = vadd.f32 %v1204_v49, %v1192_v44  ;;  %v1123_v19 = vmul.f32 %v1688_v56, %v1122_v1 }
 0x3b1   :  { %1255 = vmatpush.msrb.mxu3 %v1232_v43  ;;  %v1124_v50 = vadd.f32 %v1688_v56, %v1123_v19 }
 0x3b2   :  { %1522 = vmatmul.msk.f32.vlgmr.msrb.gmra.mxu3 %vm788_vm8, %v1236_v11 }
 0x3b3   :  { %v1128_v28 = vsel %vm1127_vm12, %v1688_v56, %v1124_v50 }
 0x3b4   :  { %v1133_v20 = vsel %vm1130_vm14, %v1132_v32, %v1128_v28 }
 0x3b5   :  { %v1184_v9 = vmul.f32 %v1686_v39, %v1133_v20 }
 0x3b7   :  { %v1188_v16 = vsel %vm1180_vm15, %v1133_v20, %v1184_v9 }
 0x3bb   :  { %v550_v51 = vpop.permute.xlu2 %549 }
 0x3bc   :  { %v552_v0 = vmul.f32 %v2297_v2, %v550_v51 }
 0x3be   :  { %v557_v26 = vadd.f32 %v555_v25, %v552_v0  ;;  %v1540_v25 = vld [vmem:[%s2480_s5 + $0x4] sm:$0xf] }
 0x3c0   :  { %1267 = vperm.xlu1 %1565, %v557_v26  }
 0x3d3   :  { %v2389_v39 = vpop.permute.xlu1 %1261 }
 0x3d4   :  { %v1277_v2 = vmul.f32 %v1272_v36, %v2389_v39 }
 0x3d6   :  { %1523 = vmatpush.msk.msra.mxu3 %vm1291_vm0, %v1277_v2 }
 0x3d7   :  { %1524 = vmatmul.msk.f32.vlgmr.msra.gmra.mxu3 %vm1278_vm1, %v1273_v15 }
 0x3df   :  { %1525 = vmatmul.msk.f32.gmra.mxu3 %vm1278_vm1, %v1274_v40 }
 0x3e7   :  { %1526 = vmatmul.msk.f32.gmra.mxu3 %vm1278_vm1, %v1275_v12 }
 0x3ef   :  { %1527 = vmatmul.msk.f32.gmra.mxu3 %vm1278_vm1, %v1276_v7 }
 0x435   :  { %v2405_v21 = vpop.f32.mrf.mxu3 }
 0x436   :  { %v1264_v7 = vmul.f32 %v2389_v39, %v2405_v21 }
 0x45a   :  { %v1312_v6 = vpop.f32.mrf.mxu3 }
 0x45b   :  { %v1324_v56 = vmul.f32 %v1312_v6, %v1188_v16 }
 0x45d   :  { %v1333_v41 = vmul.f32 %v1324_v56, %v2357_v58 }
 0x462   :  { %v1315_v23 = vpop.f32.mrf.mxu3 }
 0x463   :  { %v1325_v52 = vmul.f32 %v1315_v23, %v2350_v62 }
 0x465   :  { %v1334_v4 = vmul.f32 %v1325_v52, %v2327_v27  ;;  %v1530_v27 = vld [vmem:[%s2482_s4 + $0x30] sm:$0xff] }
 0x46a   :  { %v1318_v34 = vpop.f32.mrf.mxu3 }
 0x46b   :  { %v1326_v57 = vmul.f32 %v1318_v34, %v1190_v45  ;;  %v1528_v45 = vld [vmem:[%s2482_s4 + $0x20] sm:$0xff] }
 0x46d   :  { %v1335_v29 = vmul.f32 %v1326_v57, %v2347_v10 }
 0x472   :  { %v1321_v60 = vpop.f32.mrf.mxu3 }
 0x473   :  { %v1327_v18 = vmul.f32 %v1321_v60, %v2344_v55  ;;  %v1531_v55 = vld [vmem:[%s2482_s4 + $0x38] sm:$0xff] }
 0x475   :  { %v1336_v33 = vmul.f32 %v1327_v18, %v2323_v24  ;;  %v1529_v24 = vld [vmem:[%s2482_s4 + $0x28] sm:$0xff] }
 0x477   :  { %1361 = vmatpush.msrb.mxu0 %v1336_v33 }
 0x479   :  { %1362 = vmatpush.msrb.mxu0 %v1335_v29 }
 0x47b   :  { %1363 = vmatpush.msrb.mxu0 %v1334_v4 }
 0x47d   :  { %1364 = vmatpush.msrb.mxu0 %v1333_v41 }
 0x47e   :  { %1532 = vmatmul.msk.f32.vlgmr.msrb.gmra.mxu0 %vm788_vm8, %v1528_v45 }
 0x486   :  { %1533 = vmatmul.msk.f32.gmra.mxu0 %vm788_vm8, %v1529_v24 }
 0x48e   :  { %1534 = vmatmul.msk.f32.gmra.mxu0 %vm788_vm8, %v1530_v27 }
 0x496   :  { %1535 = vmatmul.msk.f32.gmra.mxu0 %vm788_vm8, %v1531_v55 }
 0x4fb   :  { %v1366_v10 = vpop.f32.mrf.mxu0 }
 0x4fc   :  { %v1378_v43 = vmul.f32 %v1366_v10, %v2282_v22 }
 0x4fe   :  { %v1386_v8 = vmul.f32 %v1378_v43, %v2068_v14  ;;  %v1385_v14 = vld [vmem:[%s2482_s4 + $0x18] sm:$0xff] }
 0x503   :  { %v1369_v62 = vpop.f32.mrf.mxu0 }
 0x504   :  { %v1379_v49 = vmul.f32 %v1369_v62, %v2274_v5 }
 0x506   :  { %v1387_v19 = vmul.f32 %v1379_v49, %v2095_v37 }
 0x50b   :  { %v1372_v58 = vpop.f32.mrf.mxu0 }
 0x50c   :  { %v1380_v44 = vmul.f32 %v1372_v58, %v2265_v59  ;;  %v1382_v59 = vld [vmem:[%s2482_s4] sm:$0xff] }
 0x50e   :  { %v1388_v11 = vmul.f32 %v1380_v44, %v2092_v35 }
 0x513   :  { %v1375_v38 = vpop.f32.mrf.mxu0 }
 0x514   :  { %v1381_v1 = vmul.f32 %v1375_v38, %v2084_v31  ;;  %v1384_v31 = vld [vmem:[%s2482_s4 + $0x10] sm:$0xff] }
 0x516   :  { %v1389_v30 = vmul.f32 %v1381_v1, %v2062_v13  ;;  %v1383_v13 = vld [vmem:[%s2482_s4 + $0x8] sm:$0xff] }
 0x518   :  { %1414 = vmatpush.msrb.mxu1 %v1389_v30 }
 0x51a   :  { %1415 = vmatpush.msrb.mxu1 %v1388_v11 }
 0x51c   :  { %1416 = vmatpush.msrb.mxu1 %v1387_v19 }
 0x51e   :  { %1417 = vmatpush.msrb.mxu1 %v1386_v8 }
 0x51f   :  { %1536 = vmatmul.msk.f32.vlgmr.msrb.gmra.mxu1 %vm788_vm8, %v1382_v59 }
 0x527   :  { %1537 = vmatmul.msk.f32.gmra.mxu1 %vm788_vm8, %v1383_v13 }
 0x52f   :  { %1538 = vmatmul.msk.f32.gmra.mxu1 %vm788_vm8, %v1384_v31 }
 0x537   :  { %1539 = vmatmul.msk.f32.gmra.mxu1 %vm788_vm8, %v1385_v14 }
 0x59c   :  { %v1419_v35 = vpop.f32.mrf.mxu1 }
 0x59d   :  { %v1431_v9 = vmul.f32 %v1419_v35, %v1973_v48 }
 0x5a4   :  { %v1422_v37 = vpop.f32.mrf.mxu1 }
 0x5a5   :  { %v1432_v28 = vmul.f32 %v1422_v37, %v2007_v54 }
 0x5a7   :  { %v1438_v51 = vmul.f32 %v1432_v28, %v1948_v63 }
 0x5ac   :  { %v1425_v5 = vpop.f32.mrf.mxu1 }
 0x5ad   :  { %v1433_v50 = vmul.f32 %v1425_v5, %v1945_v61  ;;  %v1437_v61 = vmul.f32 %v1431_v9, %v1892_v3 }
 0x5af   :  { %v1439_v16 = vmul.f32 %v1433_v50, %v1908_v42 }
 0x5b4   :  { %v1428_v22 = vpop.f32.mrf.mxu1 }
 0x5b5   :  { %v1434_v32 = vmul.f32 %v1428_v22, %v1934_v47  ;;  %v1697_v47 = vmov 4.0  }
 0x5b6   :  { %1691 = vrcp.f32 %v1697_v47 }
 0x5b7   :  { %v1440_v20 = vmul.f32 %v1434_v32, %v1880_v53 }
 0x5b9   :  { %1456 = vmatpush.msra.mxu2 %v1440_v20 }
 0x5bb   :  { %1457 = vmatpush.msra.mxu2 %v1439_v16 }
 0x5bc   :  { %v1692_v53 = vpop.eup %1691 }
 0x5bd   :  { %1458 = vmatpush.msra.mxu2 %v1438_v51  ;;  %v1482_v48 = vmul.f32 4.0, %v1692_v53 }
 0x5bf   :  { %1459 = vmatpush.msra.mxu2 %v1437_v61  ;;  %v1483_v63 = vsub.f32 1.0, %v1482_v48 }
 0x5c0   :  { %1541 = vmatmul.msk.f32.vlgmr.msra.gmra.mxu2 %vm788_vm8, %v1540_v25  ;;  %vm1486_vm8 = vweird.f32 %v1692_v53 }
 0x5c1   :  { %v1484_v3 = vmul.f32 %v1692_v53, %v1483_v63 }
 0x5c3   :  { %v1485_v34 = vadd.f32 %v1692_v53, %v1484_v3 }
 0x5c5   :  { %v1487_v56 = vsel %vm1486_vm8, %v1692_v53, %v1485_v34 }
 0x643   :  { %v1461_v54 = vpop.f32.mrf.mxu2 }
 0x644   :  { %v1464_v42 = vmul.f32 %v1461_v54, %v2385_v17  ;;  %v1473_v0 = vmul.f32 %v1461_v54, %v1461_v54  ;;  %v1268_v17 = vpop.permute.xlu1 %1267 }
 0x645   :  { %v1270_v18 = vadd.f32 %v1268_v17, %v1264_v7 }
 0x646   :  { %v1465_v26 = vsel %vm1291_vm0, %v1464_v42, 0.0  ;;  %v1474_v36 = vsel %vm1291_vm0, %v1473_v0, 0.0 }
 0x647   :  { %v1466_v2 = vrot.slane %v1465_v26, 4  ;;  %v1475_v15 = vrot.slane %v1474_v36, 4  ;;  %v1271_v41 = vmul.f32 %v1270_v18, %v2380_v46 }
 0x649   :  { %v1467_v40 = vadd.f32 %v1466_v2, %v1465_v26  ;;  %v1476_v12 = vadd.f32 %v1475_v15, %v1474_v36 }
 0x64b   :  { %v1468_v6 = vrot.slane %v1467_v40, 2  ;;  %v1477_v23 = vrot.slane %v1476_v12, 2 }
 0x64d   :  { %v1469_v60 = vadd.f32 %v1468_v6, %v1467_v40  ;;  %v1478_v57 = vadd.f32 %v1477_v23, %v1476_v12 }
 0x64f   :  { %v1470_v52 = vrot.slane %v1469_v60, 1  ;;  %v1479_v33 = vrot.slane %v1478_v57, 1 }
 0x651   :  { %v1471_v29 = vadd.f32 %v1470_v52, %v1469_v60  ;;  %v1480_v4 = vadd.f32 %v1479_v33, %v1478_v57 }
 0x653   :  { %v1472_v45 = vsub.f32 0.0, %v1471_v29  ;;  %v1488_v24 = vmul.f32 %v1487_v56, %v1480_v4 }
 0x655   :  { %v1489_v39 = vsel %vm1291_vm0, %v1271_v41, %v1472_v45 }
 0x656   :  { %v1491_v21 = vsel %vm1490_vm2, %v1489_v39, %v1488_v24 }
 0x657   :  { %1492 = vst [vmem:[%s2483_s8] sm:$0x3f] %v1491_v21 }

</bundles_post_ra>
